<compile_context>
chip_gen: v7x
topology: tpu7x:2x2x1
jax: 0.10.0
libtpu: 0.0.40
codegen_flags: <defaults>
</compile_context>

<pallas_src>
import functools

import jax
import jax.numpy as jnp
from jax.experimental import pallas as pl
from jax.experimental.pallas import tpu as pltpu

# ----------------------- ModelArgs (small test config) -----------------------
EMB = 32                        # embeddings_dims
BLOCK = 8                       # block_size (sequence length)
VOCAB = 64                      # vocab_size
N_LAYERS = 2                    # no_of_decoder_layers
N_HEADS = 4                     # ModelArgs.no_of_heads
MQA_GROUPS = 2                  # mqa_heads passed by DecoderLayer
N_Q_HEADS = N_HEADS // MQA_GROUPS     # GQA.no_of_q_heads = 2 (number of MQA groups)
KV_PER_MQA = 2                  # MQA.no_of_kv_heads (query heads per group)
HEAD = EMB // N_Q_HEADS         # MQA.head_size = 16
HIDDEN = int(2 * (4 * EMB) / 3)       # SwiGLU hidden dims = 85
HIDDEN_PAD = 128                # zero-padded hidden (lane-dense, numerically exact)
BATCH = 2
RMS_EPS = float(jnp.finfo(jnp.float32).eps)

QKV_W = N_Q_HEADS * (KV_PER_MQA + 2) * HEAD    # 128 fused q/k/v output lanes per layer
CAT_W = N_Q_HEADS * KV_PER_MQA * HEAD          # 64 = width of concatenated head outputs

_vmem = functools.partial(pl.BlockSpec, memory_space=pltpu.MemorySpace.VMEM)


# --------------------------------- kernel ------------------------------------
def _rms(x, g):
    ms = jnp.mean(x * x, axis=-1, keepdims=True)
    return x * jax.lax.rsqrt(ms + RMS_EPS) * g


def _llama_fwd_kernel(tok_ref, emb_ref, wqkv_ref, wo_ref, wgqa_ref, w1_ref,
                      w2_ref, w3_ref, g1_ref, g2_ref, wlm_ref, blm_ref,
                      out_ref):
    # ---- embedding lookup as a one-hot MXU matmul (exact, gather-free) ------
    onehot = (tok_ref[...] == jax.lax.broadcasted_iota(
        jnp.int32, (BATCH * BLOCK, VOCAB), 1)).astype(jnp.float32)
    x = jnp.dot(onehot, emb_ref[...],
                preferred_element_type=jnp.float32)           # (B*S, EMB) in VMEM

    scale = float(HEAD) ** -0.5
    row = jax.lax.broadcasted_iota(jnp.int32, (1, BLOCK, BLOCK), 1)
    col = jax.lax.broadcasted_iota(jnp.int32, (1, BLOCK, BLOCK), 2)
    causal = col <= row                              # (1, S, S); diagonal kept

    for l in range(N_LAYERS):                        # static unroll over layers
        # ------------------------- attention block ---------------------------
        xn = _rms(x, g1_ref[l])                      # (B*S, EMB)
        # fused q/k/v projection (RoPE already folded into the q/k columns)
        qkv = jnp.dot(xn, wqkv_ref[l],
                      preferred_element_type=jnp.float32)     # (B*S, 128) lane-dense
        qkv3 = qkv.reshape(BATCH, BLOCK, QKV_W)

        heads = []
        for g in range(N_Q_HEADS):                   # MQA groups (shared k, v)
            base = g * (KV_PER_MQA + 2) * HEAD
            k = qkv3[:, :, base + KV_PER_MQA * HEAD: base + (KV_PER_MQA + 1) * HEAD]
            v = qkv3[:, :, base + (KV_PER_MQA + 1) * HEAD: base + (KV_PER_MQA + 2) * HEAD]
            for j in range(KV_PER_MQA):              # query heads within the group
                q = qkv3[:, :, base + j * HEAD: base + (j + 1) * HEAD]
                s = jnp.einsum('bqd,bkd->bqk', q, k,
                               preferred_element_type=jnp.float32) * scale
                s = jnp.where(causal, s, -jnp.inf)   # causal mask (tril)
                m = jnp.max(s, axis=-1, keepdims=True)
                p = jnp.exp(s - m)
                p = p * pl.reciprocal(jnp.sum(p, axis=-1, keepdims=True),
                                      approx=True)   # EUP slot -> VALU stays free
                heads.append(jnp.einsum('bqk,bkd->bqd', p, v,
                                        preferred_element_type=jnp.float32))
        hcat = jnp.concatenate(heads, axis=-1).reshape(BATCH * BLOCK, CAT_W)
        # block-diagonal per-group o-proj, then GQA output projection
        attn = jnp.dot(hcat, wo_ref[l], preferred_element_type=jnp.float32)
        attn = jnp.dot(attn, wgqa_ref[l], preferred_element_type=jnp.float32)
        x = x + attn                                 # residual, VMEM-resident

        # ---------------- SwiGLU FFN (hidden zero-padded 85 -> 128) ----------
        xn2 = _rms(x, g2_ref[l])
        h1 = jnp.dot(xn2, w1_ref[l], preferred_element_type=jnp.float32)
        h2 = jnp.dot(xn2, w2_ref[l], preferred_element_type=jnp.float32)
        hs = (h1 * jax.nn.sigmoid(h1)) * h2          # Swish(w1 x) * (w2 x)
        x = x + jnp.dot(hs, w3_ref[l], preferred_element_type=jnp.float32)

    # ------------- tied LM head (weight pre-transposed once) + bias ----------
    out_ref[...] = (jnp.dot(x, wlm_ref[...], preferred_element_type=jnp.float32)
                    + blm_ref[...])


# -------------------------------- wrapper ------------------------------------
@jax.jit
def llama_forward(packed, tokens):
    tok = tokens.reshape(BATCH * BLOCK, 1).astype(jnp.int32)
    logits = pl.pallas_call(
        _llama_fwd_kernel,
        out_shape=jax.ShapeDtypeStruct((BATCH * BLOCK, VOCAB), jnp.float32),
        in_specs=[_vmem()] * 12,
        out_specs=_vmem(),
    )(tok, packed['emb'], packed['wqkv'], packed['wo'], packed['wgqa'],
      packed['w1'], packed['w2'], packed['w3'], packed['g1'], packed['g2'],
      packed['wlm'], packed['blm'])
    return logits.reshape(BATCH, BLOCK, VOCAB)


# ----------------------------- parameters ------------------------------------
def init_params(key):
    def normal(k, shape):
        return 0.02 * jax.random.normal(k, shape, dtype=jnp.float32)

    keys = iter(jax.random.split(key, 512))
    params = {
        'emb': normal(next(keys), (VOCAB, EMB)),     # tied with LM head weight
        'lm_bias': jnp.zeros((VOCAB,), jnp.float32),
        'layers': [],
    }
    for _ in range(N_LAYERS):
        layer = {
            'norm1': jnp.ones((EMB,), jnp.float32),
            'norm2': jnp.ones((EMB,), jnp.float32),
            'gqa_out': normal(next(keys), (EMB * N_Q_HEADS, EMB)),
            'ffn_w1': normal(next(keys), (EMB, HIDDEN)),
            'ffn_w2': normal(next(keys), (EMB, HIDDEN)),
            'ffn_w3': normal(next(keys), (HIDDEN, EMB)),
            'mqa': [],
        }
        for _ in range(N_Q_HEADS):
            layer['mqa'].append({
                'k': normal(next(keys), (EMB, HEAD)),
                'v': normal(next(keys), (EMB, HEAD)),
                'q': [normal(next(keys), (EMB, HEAD)) for _ in range(KV_PER_MQA)],
                'o': normal(next(keys), (KV_PER_MQA * HEAD, EMB)),
            })
        params['layers'].append(layer)
    return params


def _rope_matrix(d):
    # The reference apply_rope rotates feature pairs by angles that depend only
    # on the (even) feature index -> a constant linear map R on the head dim.
    pos = jnp.arange(0, d, 2, dtype=jnp.float32)
    theta = 10000.0 ** (-2.0 * pos / d)
    ang = pos * theta
    c, s = jnp.cos(ang), jnp.sin(ang)
    i = jnp.arange(d // 2)
    r = jnp.zeros((d, d), jnp.float32)
    r = r.at[2 * i, 2 * i].set(c)          # out_even <-  x_even * cos
    r = r.at[2 * i + 1, 2 * i].set(-s)     # out_even <- -x_odd  * sin
    r = r.at[2 * i, 2 * i + 1].set(s)      # out_odd  <-  x_even * sin
    r = r.at[2 * i + 1, 2 * i + 1].set(c)  # out_odd  <-  x_odd  * cos
    return r


def pack_params(params):
    """One-time repack: fuse QKV, fold RoPE, block-diag o-proj, pad hidden,
    pre-transpose tied LM head."""
    rope_r = _rope_matrix(HEAD)
    wqkv, wo, wgqa, w1, w2, w3, g1, g2 = [], [], [], [], [], [], [], []
    for layer in params['layers']:
        cols = []
        obd = jnp.zeros((CAT_W, N_Q_HEADS * EMB), jnp.float32)
        for gi, m in enumerate(layer['mqa']):
            cols.extend([m['q'][j] @ rope_r for j in range(KV_PER_MQA)])  # rope-folded q
            cols.append(m['k'] @ rope_r)                                   # rope-folded k
            cols.append(m['v'])
            obd = obd.at[gi * KV_PER_MQA * HEAD:(gi + 1) * KV_PER_MQA * HEAD,
                         gi * EMB:(gi + 1) * EMB].set(m['o'])
        wqkv.append(jnp.concatenate(cols, axis=1))                 # (EMB, 128)
        wo.append(obd)                                             # (64, 64) block-diag
        wgqa.append(layer['gqa_out'])                              # (64, EMB)
        w1.append(jnp.pad(layer['ffn_w1'], ((0, 0), (0, HIDDEN_PAD - HIDDEN))))
        w2.append(jnp.pad(layer['ffn_w2'], ((0, 0), (0, HIDDEN_PAD - HIDDEN))))
        w3.append(jnp.pad(layer['ffn_w3'], ((0, HIDDEN_PAD - HIDDEN), (0, 0))))
        g1.append(layer['norm1'].reshape(1, EMB))
        g2.append(layer['norm2'].reshape(1, EMB))
    return {
        'emb': params['emb'],                        # (VOCAB, EMB) for in-kernel lookup
        'wlm': params['emb'].T,                      # tied LM head, transposed ONCE
        'blm': params['lm_bias'].reshape(1, VOCAB),
        'wqkv': jnp.stack(wqkv), 'wo': jnp.stack(wo), 'wgqa': jnp.stack(wgqa),
        'w1': jnp.stack(w1), 'w2': jnp.stack(w2), 'w3': jnp.stack(w3),
        'g1': jnp.stack(g1), 'g2': jnp.stack(g2),
    }


# -------------------- pure-JAX reference (module-faithful) -------------------
def _reference_forward(params, tokens):
    rope_r = _rope_matrix(HEAD)
    x = params['emb'][tokens]                                    # (B, S, EMB)

    def rms(v, g):
        return v * jax.lax.rsqrt(jnp.mean(v * v, -1, keepdims=True) + RMS_EPS) * g

    causal = jnp.tril(jnp.ones((BLOCK, BLOCK), dtype=bool))
    for layer in params['layers']:
        xn = rms(x, layer['norm1'])
        groups = []
        for m in layer['mqa']:
            k = (xn @ m['k']) @ rope_r
            v = xn @ m['v']
            heads = []
            for j in range(KV_PER_MQA):
                q = (xn @ m['q'][j]) @ rope_r
                s = jnp.einsum('bqd,bkd->bqk', q, k) * float(HEAD) ** -0.5
                s = jnp.where(causal, s, -jnp.inf)
                p = jax.nn.softmax(s, axis=-1)
                heads.append(jnp.einsum('bqk,bkd->bqd', p, v))
            groups.append(jnp.concatenate(heads, -1) @ m['o'])
        x = x + jnp.concatenate(groups, -1) @ layer['gqa_out']
        xn2 = rms(x, layer['norm2'])
        h1 = xn2 @ layer['ffn_w1']
        h2 = xn2 @ layer['ffn_w2']
        x = x + (h1 * jax.nn.sigmoid(h1) * h2) @ layer['ffn_w3']
    return x @ params['emb'].T + params['lm_bias']


if __name__ == "__main__":
    root = jax.random.PRNGKey(0)
    pkey, tkey = jax.random.split(root)
    raw = init_params(pkey)
    packed = pack_params(raw)
    tokens = jax.random.randint(tkey, (BATCH, BLOCK), 0, VOCAB, dtype=jnp.int32)

    logits = llama_forward(packed, tokens)
    jax.block_until_ready(logits)
    assert logits.shape == (BATCH, BLOCK, VOCAB), logits.shape
    assert logits.dtype == jnp.float32

    ref = _reference_forward(raw, tokens)
    max_err = float(jnp.max(jnp.abs(logits - ref)))
    assert max_err < 1e-2, f"max abs err vs reference: {max_err}"
    print("KERNEL_OK")
</pallas_src>

<mosaic_0001>
module attributes {stable_mosaic.version = 11 : i64} {
  func.func @_llama_fwd_kernel(%arg0: memref<16x1xi32, #tpu.memory_space<vmem>>, %arg1: memref<64x32xf32, #tpu.memory_space<vmem>>, %arg2: memref<2x32x128xf32, #tpu.memory_space<vmem>>, %arg3: memref<2x64x64xf32, #tpu.memory_space<vmem>>, %arg4: memref<2x64x32xf32, #tpu.memory_space<vmem>>, %arg5: memref<2x32x128xf32, #tpu.memory_space<vmem>>, %arg6: memref<2x32x128xf32, #tpu.memory_space<vmem>>, %arg7: memref<2x128x32xf32, #tpu.memory_space<vmem>>, %arg8: memref<2x1x32xf32, #tpu.memory_space<vmem>>, %arg9: memref<2x1x32xf32, #tpu.memory_space<vmem>>, %arg10: memref<32x64xf32, #tpu.memory_space<vmem>>, %arg11: memref<1x64xf32, #tpu.memory_space<vmem>>, %arg12: memref<16x64xf32, #tpu.memory_space<vmem>>) attributes {dimension_semantics = [], scalar_prefetch = 0 : i64, scratch_operands = 0 : i64, tpu.core_type = #tpu.core_type<tc>} {
    %c0 = arith.constant 0 : index
    %c0_0 = arith.constant 0 : index
    %0 = vector.load %arg0[%c0, %c0_0] : memref<16x1xi32, #tpu.memory_space<vmem>>, vector<16x1xi32>
    %1 = tpu.iota {dimensions = array<i32: 1>} : vector<16x64xi32>
    %2 = vector.broadcast %0 : vector<16x1xi32> to vector<16x64xi32>
    %3 = arith.cmpi eq, %2, %1 : vector<16x64xi32>
    %4 = arith.extui %3 : vector<16x64xi1> to vector<16x64xi32>
    %5 = arith.sitofp %4 : vector<16x64xi32> to vector<16x64xf32>
    %c0_1 = arith.constant 0 : index
    %c0_2 = arith.constant 0 : index
    %6 = vector.load %arg1[%c0_1, %c0_2] : memref<64x32xf32, #tpu.memory_space<vmem>>, vector<64x32xf32>
    %cst = arith.constant dense<0.000000e+00> : vector<16x32xf32>
    %7 = tpu.matmul %5, %6, %cst {dimension_numbers = #tpu.dot_dimension_numbers<[1], [0], [0], [1], [0, 0, 1, 1], [], []>} : vector<16x64xf32>, vector<64x32xf32>, vector<16x32xf32> -> vector<16x32xf32>
    %8 = tpu.iota {dimensions = array<i32: 1>} : vector<1x8x8xi32>
    %9 = tpu.iota {dimensions = array<i32: 2>} : vector<1x8x8xi32>
    %10 = arith.cmpi sle, %9, %8 : vector<1x8x8xi32>
    %c0_3 = arith.constant 0 : index
    %c0_4 = arith.constant 0 : index
    %c0_5 = arith.constant 0 : index
    %11 = vector.load %arg8[%c0_3, %c0_4, %c0_5] : memref<2x1x32xf32, #tpu.memory_space<vmem>>, vector<1x1x32xf32>
    %12 = vector.shape_cast %11 : vector<1x1x32xf32> to vector<1x32xf32>
    %13 = arith.mulf %7, %7 : vector<16x32xf32>
    %cst_6 = arith.constant dense<0.000000e+00> : vector<16xf32>
    %14 = vector.multi_reduction <add>, %13, %cst_6 [1] : vector<16x32xf32> to vector<16xf32>
    %15 = vector.shape_cast %14 : vector<16xf32> to vector<16x1xf32>
    %cst_7 = arith.constant 3.200000e+01 : f32
    %16 = vector.broadcast %cst_7 : f32 to vector<16x1xf32>
    %17 = arith.divf %15, %16 : vector<16x1xf32>
    %cst_8 = arith.constant 1.1920929E-7 : f32
    %18 = vector.broadcast %cst_8 : f32 to vector<16x1xf32>
    %19 = arith.addf %17, %18 : vector<16x1xf32>
    %20 = math.rsqrt %19 : vector<16x1xf32>
    %21 = vector.broadcast %20 : vector<16x1xf32> to vector<16x32xf32>
    %22 = arith.mulf %7, %21 : vector<16x32xf32>
    %23 = vector.broadcast %12 : vector<1x32xf32> to vector<16x32xf32>
    %24 = arith.mulf %22, %23 : vector<16x32xf32>
    %c0_9 = arith.constant 0 : index
    %c0_10 = arith.constant 0 : index
    %c0_11 = arith.constant 0 : index
    %25 = vector.load %arg2[%c0_9, %c0_10, %c0_11] : memref<2x32x128xf32, #tpu.memory_space<vmem>>, vector<1x32x128xf32>
    %26 = vector.shape_cast %25 : vector<1x32x128xf32> to vector<32x128xf32>
    %cst_12 = arith.constant dense<0.000000e+00> : vector<16x128xf32>
    %27 = tpu.matmul %24, %26, %cst_12 {dimension_numbers = #tpu.dot_dimension_numbers<[1], [0], [0], [1], [0, 0, 1, 1], [], []>} : vector<16x32xf32>, vector<32x128xf32>, vector<16x128xf32> -> vector<16x128xf32>
    %28 = vector.shape_cast %27 : vector<16x128xf32> to vector<2x8x128xf32>
    %29 = vector.extract_strided_slice %28 {offsets = [0, 0, 32], sizes = [2, 8, 16], strides = [1, 1, 1]} : vector<2x8x128xf32> to vector<2x8x16xf32>
    %30 = vector.extract_strided_slice %28 {offsets = [0, 0, 48], sizes = [2, 8, 16], strides = [1, 1, 1]} : vector<2x8x128xf32> to vector<2x8x16xf32>
    %31 = vector.extract_strided_slice %28 {offsets = [0, 0, 0], sizes = [2, 8, 16], strides = [1, 1, 1]} : vector<2x8x128xf32> to vector<2x8x16xf32>
    "tpu.trace_start"() <{level = 10 : i32, message = "bqd,bkd->bqk"}> : () -> ()
    %cst_13 = arith.constant dense<0.000000e+00> : vector<2x8x8xf32>
    %32 = tpu.matmul %31, %29, %cst_13 {dimension_numbers = #tpu.dot_dimension_numbers<[2], [2], [1], [1], [0, 0, 0, 1, 1, 1], [0], [0]>} : vector<2x8x16xf32>, vector<2x8x16xf32>, vector<2x8x8xf32> -> vector<2x8x8xf32>
    "tpu.trace_stop"() : () -> ()
    %cst_14 = arith.constant 2.500000e-01 : f32
    %33 = vector.broadcast %cst_14 : f32 to vector<2x8x8xf32>
    %34 = arith.mulf %32, %33 : vector<2x8x8xf32>
    %cst_15 = arith.constant 0xFF800000 : f32
    %35 = vector.shape_cast %10 : vector<1x8x8xi1> to vector<1x8x8xi1>
    %36 = vector.broadcast %35 : vector<1x8x8xi1> to vector<2x8x8xi1>
    %37 = vector.broadcast %cst_15 : f32 to vector<2x8x8xf32>
    %38 = arith.select %36, %34, %37 : vector<2x8x8xi1>, vector<2x8x8xf32>
    %cst_16 = arith.constant dense<0xFF800000> : vector<2x8xf32>
    %39 = vector.multi_reduction <maximumf>, %38, %cst_16 [2] : vector<2x8x8xf32> to vector<2x8xf32>
    %40 = vector.shape_cast %39 : vector<2x8xf32> to vector<2x8x1xf32>
    %41 = vector.broadcast %40 : vector<2x8x1xf32> to vector<2x8x8xf32>
    %42 = arith.subf %38, %41 : vector<2x8x8xf32>
    %43 = math.exp %42 : vector<2x8x8xf32>
    %cst_17 = arith.constant dense<0.000000e+00> : vector<2x8xf32>
    %44 = vector.multi_reduction <add>, %43, %cst_17 [2] : vector<2x8x8xf32> to vector<2x8xf32>
    %45 = vector.shape_cast %44 : vector<2x8xf32> to vector<2x8x1xf32>
    %46 = tpu.reciprocal %45 {approx = true} : vector<2x8x1xf32> -> vector<2x8x1xf32>
    %47 = vector.broadcast %46 : vector<2x8x1xf32> to vector<2x8x8xf32>
    %48 = arith.mulf %43, %47 : vector<2x8x8xf32>
    "tpu.trace_start"() <{level = 10 : i32, message = "bqk,bkd->bqd"}> : () -> ()
    %cst_18 = arith.constant dense<0.000000e+00> : vector<2x8x16xf32>
    %49 = tpu.matmul %48, %30, %cst_18 {dimension_numbers = #tpu.dot_dimension_numbers<[2], [1], [1], [2], [0, 0, 0, 1, 1, 2], [0], [0]>} : vector<2x8x8xf32>, vector<2x8x16xf32>, vector<2x8x16xf32> -> vector<2x8x16xf32>
    "tpu.trace_stop"() : () -> ()
    %50 = vector.extract_strided_slice %28 {offsets = [0, 0, 16], sizes = [2, 8, 16], strides = [1, 1, 1]} : vector<2x8x128xf32> to vector<2x8x16xf32>
    "tpu.trace_start"() <{level = 10 : i32, message = "bqd,bkd->bqk"}> : () -> ()
    %cst_19 = arith.constant dense<0.000000e+00> : vector<2x8x8xf32>
    %51 = tpu.matmul %50, %29, %cst_19 {dimension_numbers = #tpu.dot_dimension_numbers<[2], [2], [1], [1], [0, 0, 0, 1, 1, 1], [0], [0]>} : vector<2x8x16xf32>, vector<2x8x16xf32>, vector<2x8x8xf32> -> vector<2x8x8xf32>
    "tpu.trace_stop"() : () -> ()
    %cst_20 = arith.constant 2.500000e-01 : f32
    %52 = vector.broadcast %cst_20 : f32 to vector<2x8x8xf32>
    %53 = arith.mulf %51, %52 : vector<2x8x8xf32>
    %cst_21 = arith.constant 0xFF800000 : f32
    %54 = vector.shape_cast %10 : vector<1x8x8xi1> to vector<1x8x8xi1>
    %55 = vector.broadcast %54 : vector<1x8x8xi1> to vector<2x8x8xi1>
    %56 = vector.broadcast %cst_21 : f32 to vector<2x8x8xf32>
    %57 = arith.select %55, %53, %56 : vector<2x8x8xi1>, vector<2x8x8xf32>
    %cst_22 = arith.constant dense<0xFF800000> : vector<2x8xf32>
    %58 = vector.multi_reduction <maximumf>, %57, %cst_22 [2] : vector<2x8x8xf32> to vector<2x8xf32>
    %59 = vector.shape_cast %58 : vector<2x8xf32> to vector<2x8x1xf32>
    %60 = vector.broadcast %59 : vector<2x8x1xf32> to vector<2x8x8xf32>
    %61 = arith.subf %57, %60 : vector<2x8x8xf32>
    %62 = math.exp %61 : vector<2x8x8xf32>
    %cst_23 = arith.constant dense<0.000000e+00> : vector<2x8xf32>
    %63 = vector.multi_reduction <add>, %62, %cst_23 [2] : vector<2x8x8xf32> to vector<2x8xf32>
    %64 = vector.shape_cast %63 : vector<2x8xf32> to vector<2x8x1xf32>
    %65 = tpu.reciprocal %64 {approx = true} : vector<2x8x1xf32> -> vector<2x8x1xf32>
    %66 = vector.broadcast %65 : vector<2x8x1xf32> to vector<2x8x8xf32>
    %67 = arith.mulf %62, %66 : vector<2x8x8xf32>
    "tpu.trace_start"() <{level = 10 : i32, message = "bqk,bkd->bqd"}> : () -> ()
    %cst_24 = arith.constant dense<0.000000e+00> : vector<2x8x16xf32>
    %68 = tpu.matmul %67, %30, %cst_24 {dimension_numbers = #tpu.dot_dimension_numbers<[2], [1], [1], [2], [0, 0, 0, 1, 1, 2], [0], [0]>} : vector<2x8x8xf32>, vector<2x8x16xf32>, vector<2x8x16xf32> -> vector<2x8x16xf32>
    "tpu.trace_stop"() : () -> ()
    %69 = vector.extract_strided_slice %28 {offsets = [0, 0, 96], sizes = [2, 8, 16], strides = [1, 1, 1]} : vector<2x8x128xf32> to vector<2x8x16xf32>
    %70 = vector.extract_strided_slice %28 {offsets = [0, 0, 112], sizes = [2, 8, 16], strides = [1, 1, 1]} : vector<2x8x128xf32> to vector<2x8x16xf32>
    %71 = vector.extract_strided_slice %28 {offsets = [0, 0, 64], sizes = [2, 8, 16], strides = [1, 1, 1]} : vector<2x8x128xf32> to vector<2x8x16xf32>
    "tpu.trace_start"() <{level = 10 : i32, message = "bqd,bkd->bqk"}> : () -> ()
    %cst_25 = arith.constant dense<0.000000e+00> : vector<2x8x8xf32>
    %72 = tpu.matmul %71, %69, %cst_25 {dimension_numbers = #tpu.dot_dimension_numbers<[2], [2], [1], [1], [0, 0, 0, 1, 1, 1], [0], [0]>} : vector<2x8x16xf32>, vector<2x8x16xf32>, vector<2x8x8xf32> -> vector<2x8x8xf32>
    "tpu.trace_stop"() : () -> ()
    %cst_26 = arith.constant 2.500000e-01 : f32
    %73 = vector.broadcast %cst_26 : f32 to vector<2x8x8xf32>
    %74 = arith.mulf %72, %73 : vector<2x8x8xf32>
    %cst_27 = arith.constant 0xFF800000 : f32
    %75 = vector.shape_cast %10 : vector<1x8x8xi1> to vector<1x8x8xi1>
    %76 = vector.broadcast %75 : vector<1x8x8xi1> to vector<2x8x8xi1>
    %77 = vector.broadcast %cst_27 : f32 to vector<2x8x8xf32>
    %78 = arith.select %76, %74, %77 : vector<2x8x8xi1>, vector<2x8x8xf32>
    %cst_28 = arith.constant dense<0xFF800000> : vector<2x8xf32>
    %79 = vector.multi_reduction <maximumf>, %78, %cst_28 [2] : vector<2x8x8xf32> to vector<2x8xf32>
    %80 = vector.shape_cast %79 : vector<2x8xf32> to vector<2x8x1xf32>
    %81 = vector.broadcast %80 : vector<2x8x1xf32> to vector<2x8x8xf32>
    %82 = arith.subf %78, %81 : vector<2x8x8xf32>
    %83 = math.exp %82 : vector<2x8x8xf32>
    %cst_29 = arith.constant dense<0.000000e+00> : vector<2x8xf32>
    %84 = vector.multi_reduction <add>, %83, %cst_29 [2] : vector<2x8x8xf32> to vector<2x8xf32>
    %85 = vector.shape_cast %84 : vector<2x8xf32> to vector<2x8x1xf32>
    %86 = tpu.reciprocal %85 {approx = true} : vector<2x8x1xf32> -> vector<2x8x1xf32>
    %87 = vector.broadcast %86 : vector<2x8x1xf32> to vector<2x8x8xf32>
    %88 = arith.mulf %83, %87 : vector<2x8x8xf32>
    "tpu.trace_start"() <{level = 10 : i32, message = "bqk,bkd->bqd"}> : () -> ()
    %cst_30 = arith.constant dense<0.000000e+00> : vector<2x8x16xf32>
    %89 = tpu.matmul %88, %70, %cst_30 {dimension_numbers = #tpu.dot_dimension_numbers<[2], [1], [1], [2], [0, 0, 0, 1, 1, 2], [0], [0]>} : vector<2x8x8xf32>, vector<2x8x16xf32>, vector<2x8x16xf32> -> vector<2x8x16xf32>
    "tpu.trace_stop"() : () -> ()
    %90 = vector.extract_strided_slice %28 {offsets = [0, 0, 80], sizes = [2, 8, 16], strides = [1, 1, 1]} : vector<2x8x128xf32> to vector<2x8x16xf32>
    "tpu.trace_start"() <{level = 10 : i32, message = "bqd,bkd->bqk"}> : () -> ()
    %cst_31 = arith.constant dense<0.000000e+00> : vector<2x8x8xf32>
    %91 = tpu.matmul %90, %69, %cst_31 {dimension_numbers = #tpu.dot_dimension_numbers<[2], [2], [1], [1], [0, 0, 0, 1, 1, 1], [0], [0]>} : vector<2x8x16xf32>, vector<2x8x16xf32>, vector<2x8x8xf32> -> vector<2x8x8xf32>
    "tpu.trace_stop"() : () -> ()
    %cst_32 = arith.constant 2.500000e-01 : f32
    %92 = vector.broadcast %cst_32 : f32 to vector<2x8x8xf32>
    %93 = arith.mulf %91, %92 : vector<2x8x8xf32>
    %cst_33 = arith.constant 0xFF800000 : f32
    %94 = vector.shape_cast %10 : vector<1x8x8xi1> to vector<1x8x8xi1>
    %95 = vector.broadcast %94 : vector<1x8x8xi1> to vector<2x8x8xi1>
    %96 = vector.broadcast %cst_33 : f32 to vector<2x8x8xf32>
    %97 = arith.select %95, %93, %96 : vector<2x8x8xi1>, vector<2x8x8xf32>
    %cst_34 = arith.constant dense<0xFF800000> : vector<2x8xf32>
    %98 = vector.multi_reduction <maximumf>, %97, %cst_34 [2] : vector<2x8x8xf32> to vector<2x8xf32>
    %99 = vector.shape_cast %98 : vector<2x8xf32> to vector<2x8x1xf32>
    %100 = vector.broadcast %99 : vector<2x8x1xf32> to vector<2x8x8xf32>
    %101 = arith.subf %97, %100 : vector<2x8x8xf32>
    %102 = math.exp %101 : vector<2x8x8xf32>
    %cst_35 = arith.constant dense<0.000000e+00> : vector<2x8xf32>
    %103 = vector.multi_reduction <add>, %102, %cst_35 [2] : vector<2x8x8xf32> to vector<2x8xf32>
    %104 = vector.shape_cast %103 : vector<2x8xf32> to vector<2x8x1xf32>
    %105 = tpu.reciprocal %104 {approx = true} : vector<2x8x1xf32> -> vector<2x8x1xf32>
    %106 = vector.broadcast %105 : vector<2x8x1xf32> to vector<2x8x8xf32>
    %107 = arith.mulf %102, %106 : vector<2x8x8xf32>
    "tpu.trace_start"() <{level = 10 : i32, message = "bqk,bkd->bqd"}> : () -> ()
    %cst_36 = arith.constant dense<0.000000e+00> : vector<2x8x16xf32>
    %108 = tpu.matmul %107, %70, %cst_36 {dimension_numbers = #tpu.dot_dimension_numbers<[2], [1], [1], [2], [0, 0, 0, 1, 1, 2], [0], [0]>} : vector<2x8x8xf32>, vector<2x8x16xf32>, vector<2x8x16xf32> -> vector<2x8x16xf32>
    "tpu.trace_stop"() : () -> ()
    %109 = tpu.concatenate %49, %68, %89, %108 in 2 : vector<2x8x16xf32>, vector<2x8x16xf32>, vector<2x8x16xf32>, vector<2x8x16xf32> -> vector<2x8x64xf32>
    %110 = vector.shape_cast %109 : vector<2x8x64xf32> to vector<16x64xf32>
    %c0_37 = arith.constant 0 : index
    %c0_38 = arith.constant 0 : index
    %c0_39 = arith.constant 0 : index
    %111 = vector.load %arg3[%c0_37, %c0_38, %c0_39] : memref<2x64x64xf32, #tpu.memory_space<vmem>>, vector<1x64x64xf32>
    %112 = vector.shape_cast %111 : vector<1x64x64xf32> to vector<64x64xf32>
    %cst_40 = arith.constant dense<0.000000e+00> : vector<16x64xf32>
    %113 = tpu.matmul %110, %112, %cst_40 {dimension_numbers = #tpu.dot_dimension_numbers<[1], [0], [0], [1], [0, 0, 1, 1], [], []>} : vector<16x64xf32>, vector<64x64xf32>, vector<16x64xf32> -> vector<16x64xf32>
    %c0_41 = arith.constant 0 : index
    %c0_42 = arith.constant 0 : index
    %c0_43 = arith.constant 0 : index
    %114 = vector.load %arg4[%c0_41, %c0_42, %c0_43] : memref<2x64x32xf32, #tpu.memory_space<vmem>>, vector<1x64x32xf32>
    %115 = vector.shape_cast %114 : vector<1x64x32xf32> to vector<64x32xf32>
    %cst_44 = arith.constant dense<0.000000e+00> : vector<16x32xf32>
    %116 = tpu.matmul %113, %115, %cst_44 {dimension_numbers = #tpu.dot_dimension_numbers<[1], [0], [0], [1], [0, 0, 1, 1], [], []>} : vector<16x64xf32>, vector<64x32xf32>, vector<16x32xf32> -> vector<16x32xf32>
    %117 = arith.addf %7, %116 : vector<16x32xf32>
    %c0_45 = arith.constant 0 : index
    %c0_46 = arith.constant 0 : index
    %c0_47 = arith.constant 0 : index
    %118 = vector.load %arg9[%c0_45, %c0_46, %c0_47] : memref<2x1x32xf32, #tpu.memory_space<vmem>>, vector<1x1x32xf32>
    %119 = vector.shape_cast %118 : vector<1x1x32xf32> to vector<1x32xf32>
    %120 = arith.mulf %117, %117 : vector<16x32xf32>
    %cst_48 = arith.constant dense<0.000000e+00> : vector<16xf32>
    %121 = vector.multi_reduction <add>, %120, %cst_48 [1] : vector<16x32xf32> to vector<16xf32>
    %122 = vector.shape_cast %121 : vector<16xf32> to vector<16x1xf32>
    %cst_49 = arith.constant 3.200000e+01 : f32
    %123 = vector.broadcast %cst_49 : f32 to vector<16x1xf32>
    %124 = arith.divf %122, %123 : vector<16x1xf32>
    %cst_50 = arith.constant 1.1920929E-7 : f32
    %125 = vector.broadcast %cst_50 : f32 to vector<16x1xf32>
    %126 = arith.addf %124, %125 : vector<16x1xf32>
    %127 = math.rsqrt %126 : vector<16x1xf32>
    %128 = vector.broadcast %127 : vector<16x1xf32> to vector<16x32xf32>
    %129 = arith.mulf %117, %128 : vector<16x32xf32>
    %130 = vector.broadcast %119 : vector<1x32xf32> to vector<16x32xf32>
    %131 = arith.mulf %129, %130 : vector<16x32xf32>
    %c0_51 = arith.constant 0 : index
    %c0_52 = arith.constant 0 : index
    %c0_53 = arith.constant 0 : index
    %132 = vector.load %arg5[%c0_51, %c0_52, %c0_53] : memref<2x32x128xf32, #tpu.memory_space<vmem>>, vector<1x32x128xf32>
    %133 = vector.shape_cast %132 : vector<1x32x128xf32> to vector<32x128xf32>
    %cst_54 = arith.constant dense<0.000000e+00> : vector<16x128xf32>
    %134 = tpu.matmul %131, %133, %cst_54 {dimension_numbers = #tpu.dot_dimension_numbers<[1], [0], [0], [1], [0, 0, 1, 1], [], []>} : vector<16x32xf32>, vector<32x128xf32>, vector<16x128xf32> -> vector<16x128xf32>
    %c0_55 = arith.constant 0 : index
    %c0_56 = arith.constant 0 : index
    %c0_57 = arith.constant 0 : index
    %135 = vector.load %arg6[%c0_55, %c0_56, %c0_57] : memref<2x32x128xf32, #tpu.memory_space<vmem>>, vector<1x32x128xf32>
    %136 = vector.shape_cast %135 : vector<1x32x128xf32> to vector<32x128xf32>
    %cst_58 = arith.constant dense<0.000000e+00> : vector<16x128xf32>
    %137 = tpu.matmul %131, %136, %cst_58 {dimension_numbers = #tpu.dot_dimension_numbers<[1], [0], [0], [1], [0, 0, 1, 1], [], []>} : vector<16x32xf32>, vector<32x128xf32>, vector<16x128xf32> -> vector<16x128xf32>
    %138 = arith.negf %134 : vector<16x128xf32>
    %139 = math.exp %138 : vector<16x128xf32>
    %cst_59 = arith.constant 1.000000e+00 : f32
    %140 = vector.broadcast %cst_59 : f32 to vector<16x128xf32>
    %141 = arith.addf %140, %139 : vector<16x128xf32>
    %142 = arith.divf %140, %141 : vector<16x128xf32>
    %143 = arith.mulf %134, %142 : vector<16x128xf32>
    %144 = arith.mulf %143, %137 : vector<16x128xf32>
    %c0_60 = arith.constant 0 : index
    %c0_61 = arith.constant 0 : index
    %c0_62 = arith.constant 0 : index
    %145 = vector.load %arg7[%c0_60, %c0_61, %c0_62] : memref<2x128x32xf32, #tpu.memory_space<vmem>>, vector<1x128x32xf32>
    %146 = vector.shape_cast %145 : vector<1x128x32xf32> to vector<128x32xf32>
    %cst_63 = arith.constant dense<0.000000e+00> : vector<16x32xf32>
    %147 = tpu.matmul %144, %146, %cst_63 {dimension_numbers = #tpu.dot_dimension_numbers<[1], [0], [0], [1], [0, 0, 1, 1], [], []>} : vector<16x128xf32>, vector<128x32xf32>, vector<16x32xf32> -> vector<16x32xf32>
    %148 = arith.addf %117, %147 : vector<16x32xf32>
    %c1 = arith.constant 1 : index
    %c0_64 = arith.constant 0 : index
    %c0_65 = arith.constant 0 : index
    %149 = vector.load %arg8[%c1, %c0_64, %c0_65] : memref<2x1x32xf32, #tpu.memory_space<vmem>>, vector<1x1x32xf32>
    %150 = vector.shape_cast %149 : vector<1x1x32xf32> to vector<1x32xf32>
    %151 = arith.mulf %148, %148 : vector<16x32xf32>
    %cst_66 = arith.constant dense<0.000000e+00> : vector<16xf32>
    %152 = vector.multi_reduction <add>, %151, %cst_66 [1] : vector<16x32xf32> to vector<16xf32>
    %153 = vector.shape_cast %152 : vector<16xf32> to vector<16x1xf32>
    %cst_67 = arith.constant 3.200000e+01 : f32
    %154 = vector.broadcast %cst_67 : f32 to vector<16x1xf32>
    %155 = arith.divf %153, %154 : vector<16x1xf32>
    %cst_68 = arith.constant 1.1920929E-7 : f32
    %156 = vector.broadcast %cst_68 : f32 to vector<16x1xf32>
    %157 = arith.addf %155, %156 : vector<16x1xf32>
    %158 = math.rsqrt %157 : vector<16x1xf32>
    %159 = vector.broadcast %158 : vector<16x1xf32> to vector<16x32xf32>
    %160 = arith.mulf %148, %159 : vector<16x32xf32>
    %161 = vector.broadcast %150 : vector<1x32xf32> to vector<16x32xf32>
    %162 = arith.mulf %160, %161 : vector<16x32xf32>
    %c1_69 = arith.constant 1 : index
    %c0_70 = arith.constant 0 : index
    %c0_71 = arith.constant 0 : index
    %163 = vector.load %arg2[%c1_69, %c0_70, %c0_71] : memref<2x32x128xf32, #tpu.memory_space<vmem>>, vector<1x32x128xf32>
    %164 = vector.shape_cast %163 : vector<1x32x128xf32> to vector<32x128xf32>
    %cst_72 = arith.constant dense<0.000000e+00> : vector<16x128xf32>
    %165 = tpu.matmul %162, %164, %cst_72 {dimension_numbers = #tpu.dot_dimension_numbers<[1], [0], [0], [1], [0, 0, 1, 1], [], []>} : vector<16x32xf32>, vector<32x128xf32>, vector<16x128xf32> -> vector<16x128xf32>
    %166 = vector.shape_cast %165 : vector<16x128xf32> to vector<2x8x128xf32>
    %167 = vector.extract_strided_slice %166 {offsets = [0, 0, 32], sizes = [2, 8, 16], strides = [1, 1, 1]} : vector<2x8x128xf32> to vector<2x8x16xf32>
    %168 = vector.extract_strided_slice %166 {offsets = [0, 0, 48], sizes = [2, 8, 16], strides = [1, 1, 1]} : vector<2x8x128xf32> to vector<2x8x16xf32>
    %169 = vector.extract_strided_slice %166 {offsets = [0, 0, 0], sizes = [2, 8, 16], strides = [1, 1, 1]} : vector<2x8x128xf32> to vector<2x8x16xf32>
    "tpu.trace_start"() <{level = 10 : i32, message = "bqd,bkd->bqk"}> : () -> ()
    %cst_73 = arith.constant dense<0.000000e+00> : vector<2x8x8xf32>
    %170 = tpu.matmul %169, %167, %cst_73 {dimension_numbers = #tpu.dot_dimension_numbers<[2], [2], [1], [1], [0, 0, 0, 1, 1, 1], [0], [0]>} : vector<2x8x16xf32>, vector<2x8x16xf32>, vector<2x8x8xf32> -> vector<2x8x8xf32>
    "tpu.trace_stop"() : () -> ()
    %cst_74 = arith.constant 2.500000e-01 : f32
    %171 = vector.broadcast %cst_74 : f32 to vector<2x8x8xf32>
    %172 = arith.mulf %170, %171 : vector<2x8x8xf32>
    %cst_75 = arith.constant 0xFF800000 : f32
    %173 = vector.shape_cast %10 : vector<1x8x8xi1> to vector<1x8x8xi1>
    %174 = vector.broadcast %173 : vector<1x8x8xi1> to vector<2x8x8xi1>
    %175 = vector.broadcast %cst_75 : f32 to vector<2x8x8xf32>
    %176 = arith.select %174, %172, %175 : vector<2x8x8xi1>, vector<2x8x8xf32>
    %cst_76 = arith.constant dense<0xFF800000> : vector<2x8xf32>
    %177 = vector.multi_reduction <maximumf>, %176, %cst_76 [2] : vector<2x8x8xf32> to vector<2x8xf32>
    %178 = vector.shape_cast %177 : vector<2x8xf32> to vector<2x8x1xf32>
    %179 = vector.broadcast %178 : vector<2x8x1xf32> to vector<2x8x8xf32>
    %180 = arith.subf %176, %179 : vector<2x8x8xf32>
    %181 = math.exp %180 : vector<2x8x8xf32>
    %cst_77 = arith.constant dense<0.000000e+00> : vector<2x8xf32>
    %182 = vector.multi_reduction <add>, %181, %cst_77 [2] : vector<2x8x8xf32> to vector<2x8xf32>
    %183 = vector.shape_cast %182 : vector<2x8xf32> to vector<2x8x1xf32>
    %184 = tpu.reciprocal %183 {approx = true} : vector<2x8x1xf32> -> vector<2x8x1xf32>
    %185 = vector.broadcast %184 : vector<2x8x1xf32> to vector<2x8x8xf32>
    %186 = arith.mulf %181, %185 : vector<2x8x8xf32>
    "tpu.trace_start"() <{level = 10 : i32, message = "bqk,bkd->bqd"}> : () -> ()
    %cst_78 = arith.constant dense<0.000000e+00> : vector<2x8x16xf32>
    %187 = tpu.matmul %186, %168, %cst_78 {dimension_numbers = #tpu.dot_dimension_numbers<[2], [1], [1], [2], [0, 0, 0, 1, 1, 2], [0], [0]>} : vector<2x8x8xf32>, vector<2x8x16xf32>, vector<2x8x16xf32> -> vector<2x8x16xf32>
    "tpu.trace_stop"() : () -> ()
    %188 = vector.extract_strided_slice %166 {offsets = [0, 0, 16], sizes = [2, 8, 16], strides = [1, 1, 1]} : vector<2x8x128xf32> to vector<2x8x16xf32>
    "tpu.trace_start"() <{level = 10 : i32, message = "bqd,bkd->bqk"}> : () -> ()
    %cst_79 = arith.constant dense<0.000000e+00> : vector<2x8x8xf32>
    %189 = tpu.matmul %188, %167, %cst_79 {dimension_numbers = #tpu.dot_dimension_numbers<[2], [2], [1], [1], [0, 0, 0, 1, 1, 1], [0], [0]>} : vector<2x8x16xf32>, vector<2x8x16xf32>, vector<2x8x8xf32> -> vector<2x8x8xf32>
    "tpu.trace_stop"() : () -> ()
    %cst_80 = arith.constant 2.500000e-01 : f32
    %190 = vector.broadcast %cst_80 : f32 to vector<2x8x8xf32>
    %191 = arith.mulf %189, %190 : vector<2x8x8xf32>
    %cst_81 = arith.constant 0xFF800000 : f32
    %192 = vector.shape_cast %10 : vector<1x8x8xi1> to vector<1x8x8xi1>
    %193 = vector.broadcast %192 : vector<1x8x8xi1> to vector<2x8x8xi1>
    %194 = vector.broadcast %cst_81 : f32 to vector<2x8x8xf32>
    %195 = arith.select %193, %191, %194 : vector<2x8x8xi1>, vector<2x8x8xf32>
    %cst_82 = arith.constant dense<0xFF800000> : vector<2x8xf32>
    %196 = vector.multi_reduction <maximumf>, %195, %cst_82 [2] : vector<2x8x8xf32> to vector<2x8xf32>
    %197 = vector.shape_cast %196 : vector<2x8xf32> to vector<2x8x1xf32>
    %198 = vector.broadcast %197 : vector<2x8x1xf32> to vector<2x8x8xf32>
    %199 = arith.subf %195, %198 : vector<2x8x8xf32>
    %200 = math.exp %199 : vector<2x8x8xf32>
    %cst_83 = arith.constant dense<0.000000e+00> : vector<2x8xf32>
    %201 = vector.multi_reduction <add>, %200, %cst_83 [2] : vector<2x8x8xf32> to vector<2x8xf32>
    %202 = vector.shape_cast %201 : vector<2x8xf32> to vector<2x8x1xf32>
    %203 = tpu.reciprocal %202 {approx = true} : vector<2x8x1xf32> -> vector<2x8x1xf32>
    %204 = vector.broadcast %203 : vector<2x8x1xf32> to vector<2x8x8xf32>
    %205 = arith.mulf %200, %204 : vector<2x8x8xf32>
    "tpu.trace_start"() <{level = 10 : i32, message = "bqk,bkd->bqd"}> : () -> ()
    %cst_84 = arith.constant dense<0.000000e+00> : vector<2x8x16xf32>
    %206 = tpu.matmul %205, %168, %cst_84 {dimension_numbers = #tpu.dot_dimension_numbers<[2], [1], [1], [2], [0, 0, 0, 1, 1, 2], [0], [0]>} : vector<2x8x8xf32>, vector<2x8x16xf32>, vector<2x8x16xf32> -> vector<2x8x16xf32>
    "tpu.trace_stop"() : () -> ()
    %207 = vector.extract_strided_slice %166 {offsets = [0, 0, 96], sizes = [2, 8, 16], strides = [1, 1, 1]} : vector<2x8x128xf32> to vector<2x8x16xf32>
    %208 = vector.extract_strided_slice %166 {offsets = [0, 0, 112], sizes = [2, 8, 16], strides = [1, 1, 1]} : vector<2x8x128xf32> to vector<2x8x16xf32>
    %209 = vector.extract_strided_slice %166 {offsets = [0, 0, 64], sizes = [2, 8, 16], strides = [1, 1, 1]} : vector<2x8x128xf32> to vector<2x8x16xf32>
    "tpu.trace_start"() <{level = 10 : i32, message = "bqd,bkd->bqk"}> : () -> ()
    %cst_85 = arith.constant dense<0.000000e+00> : vector<2x8x8xf32>
    %210 = tpu.matmul %209, %207, %cst_85 {dimension_numbers = #tpu.dot_dimension_numbers<[2], [2], [1], [1], [0, 0, 0, 1, 1, 1], [0], [0]>} : vector<2x8x16xf32>, vector<2x8x16xf32>, vector<2x8x8xf32> -> vector<2x8x8xf32>
    "tpu.trace_stop"() : () -> ()
    %cst_86 = arith.constant 2.500000e-01 : f32
    %211 = vector.broadcast %cst_86 : f32 to vector<2x8x8xf32>
    %212 = arith.mulf %210, %211 : vector<2x8x8xf32>
    %cst_87 = arith.constant 0xFF800000 : f32
    %213 = vector.shape_cast %10 : vector<1x8x8xi1> to vector<1x8x8xi1>
    %214 = vector.broadcast %213 : vector<1x8x8xi1> to vector<2x8x8xi1>
    %215 = vector.broadcast %cst_87 : f32 to vector<2x8x8xf32>
    %216 = arith.select %214, %212, %215 : vector<2x8x8xi1>, vector<2x8x8xf32>
    %cst_88 = arith.constant dense<0xFF800000> : vector<2x8xf32>
    %217 = vector.multi_reduction <maximumf>, %216, %cst_88 [2] : vector<2x8x8xf32> to vector<2x8xf32>
    %218 = vector.shape_cast %217 : vector<2x8xf32> to vector<2x8x1xf32>
    %219 = vector.broadcast %218 : vector<2x8x1xf32> to vector<2x8x8xf32>
    %220 = arith.subf %216, %219 : vector<2x8x8xf32>
    %221 = math.exp %220 : vector<2x8x8xf32>
    %cst_89 = arith.constant dense<0.000000e+00> : vector<2x8xf32>
    %222 = vector.multi_reduction <add>, %221, %cst_89 [2] : vector<2x8x8xf32> to vector<2x8xf32>
    %223 = vector.shape_cast %222 : vector<2x8xf32> to vector<2x8x1xf32>
    %224 = tpu.reciprocal %223 {approx = true} : vector<2x8x1xf32> -> vector<2x8x1xf32>
    %225 = vector.broadcast %224 : vector<2x8x1xf32> to vector<2x8x8xf32>
    %226 = arith.mulf %221, %225 : vector<2x8x8xf32>
    "tpu.trace_start"() <{level = 10 : i32, message = "bqk,bkd->bqd"}> : () -> ()
    %cst_90 = arith.constant dense<0.000000e+00> : vector<2x8x16xf32>
    %227 = tpu.matmul %226, %208, %cst_90 {dimension_numbers = #tpu.dot_dimension_numbers<[2], [1], [1], [2], [0, 0, 0, 1, 1, 2], [0], [0]>} : vector<2x8x8xf32>, vector<2x8x16xf32>, vector<2x8x16xf32> -> vector<2x8x16xf32>
    "tpu.trace_stop"() : () -> ()
    %228 = vector.extract_strided_slice %166 {offsets = [0, 0, 80], sizes = [2, 8, 16], strides = [1, 1, 1]} : vector<2x8x128xf32> to vector<2x8x16xf32>
    "tpu.trace_start"() <{level = 10 : i32, message = "bqd,bkd->bqk"}> : () -> ()
    %cst_91 = arith.constant dense<0.000000e+00> : vector<2x8x8xf32>
    %229 = tpu.matmul %228, %207, %cst_91 {dimension_numbers = #tpu.dot_dimension_numbers<[2], [2], [1], [1], [0, 0, 0, 1, 1, 1], [0], [0]>} : vector<2x8x16xf32>, vector<2x8x16xf32>, vector<2x8x8xf32> -> vector<2x8x8xf32>
    "tpu.trace_stop"() : () -> ()
    %cst_92 = arith.constant 2.500000e-01 : f32
    %230 = vector.broadcast %cst_92 : f32 to vector<2x8x8xf32>
    %231 = arith.mulf %229, %230 : vector<2x8x8xf32>
    %cst_93 = arith.constant 0xFF800000 : f32
    %232 = vector.shape_cast %10 : vector<1x8x8xi1> to vector<1x8x8xi1>
    %233 = vector.broadcast %232 : vector<1x8x8xi1> to vector<2x8x8xi1>
    %234 = vector.broadcast %cst_93 : f32 to vector<2x8x8xf32>
    %235 = arith.select %233, %231, %234 : vector<2x8x8xi1>, vector<2x8x8xf32>
    %cst_94 = arith.constant dense<0xFF800000> : vector<2x8xf32>
    %236 = vector.multi_reduction <maximumf>, %235, %cst_94 [2] : vector<2x8x8xf32> to vector<2x8xf32>
    %237 = vector.shape_cast %236 : vector<2x8xf32> to vector<2x8x1xf32>
    %238 = vector.broadcast %237 : vector<2x8x1xf32> to vector<2x8x8xf32>
    %239 = arith.subf %235, %238 : vector<2x8x8xf32>
    %240 = math.exp %239 : vector<2x8x8xf32>
    %cst_95 = arith.constant dense<0.000000e+00> : vector<2x8xf32>
    %241 = vector.multi_reduction <add>, %240, %cst_95 [2] : vector<2x8x8xf32> to vector<2x8xf32>
    %242 = vector.shape_cast %241 : vector<2x8xf32> to vector<2x8x1xf32>
    %243 = tpu.reciprocal %242 {approx = true} : vector<2x8x1xf32> -> vector<2x8x1xf32>
    %244 = vector.broadcast %243 : vector<2x8x1xf32> to vector<2x8x8xf32>
    %245 = arith.mulf %240, %244 : vector<2x8x8xf32>
    "tpu.trace_start"() <{level = 10 : i32, message = "bqk,bkd->bqd"}> : () -> ()
    %cst_96 = arith.constant dense<0.000000e+00> : vector<2x8x16xf32>
    %246 = tpu.matmul %245, %208, %cst_96 {dimension_numbers = #tpu.dot_dimension_numbers<[2], [1], [1], [2], [0, 0, 0, 1, 1, 2], [0], [0]>} : vector<2x8x8xf32>, vector<2x8x16xf32>, vector<2x8x16xf32> -> vector<2x8x16xf32>
    "tpu.trace_stop"() : () -> ()
    %247 = tpu.concatenate %187, %206, %227, %246 in 2 : vector<2x8x16xf32>, vector<2x8x16xf32>, vector<2x8x16xf32>, vector<2x8x16xf32> -> vector<2x8x64xf32>
    %248 = vector.shape_cast %247 : vector<2x8x64xf32> to vector<16x64xf32>
    %c1_97 = arith.constant 1 : index
    %c0_98 = arith.constant 0 : index
    %c0_99 = arith.constant 0 : index
    %249 = vector.load %arg3[%c1_97, %c0_98, %c0_99] : memref<2x64x64xf32, #tpu.memory_space<vmem>>, vector<1x64x64xf32>
    %250 = vector.shape_cast %249 : vector<1x64x64xf32> to vector<64x64xf32>
    %cst_100 = arith.constant dense<0.000000e+00> : vector<16x64xf32>
    %251 = tpu.matmul %248, %250, %cst_100 {dimension_numbers = #tpu.dot_dimension_numbers<[1], [0], [0], [1], [0, 0, 1, 1], [], []>} : vector<16x64xf32>, vector<64x64xf32>, vector<16x64xf32> -> vector<16x64xf32>
    %c1_101 = arith.constant 1 : index
    %c0_102 = arith.constant 0 : index
    %c0_103 = arith.constant 0 : index
    %252 = vector.load %arg4[%c1_101, %c0_102, %c0_103] : memref<2x64x32xf32, #tpu.memory_space<vmem>>, vector<1x64x32xf32>
    %253 = vector.shape_cast %252 : vector<1x64x32xf32> to vector<64x32xf32>
    %cst_104 = arith.constant dense<0.000000e+00> : vector<16x32xf32>
    %254 = tpu.matmul %251, %253, %cst_104 {dimension_numbers = #tpu.dot_dimension_numbers<[1], [0], [0], [1], [0, 0, 1, 1], [], []>} : vector<16x64xf32>, vector<64x32xf32>, vector<16x32xf32> -> vector<16x32xf32>
    %255 = arith.addf %148, %254 : vector<16x32xf32>
    %c1_105 = arith.constant 1 : index
    %c0_106 = arith.constant 0 : index
    %c0_107 = arith.constant 0 : index
    %256 = vector.load %arg9[%c1_105, %c0_106, %c0_107] : memref<2x1x32xf32, #tpu.memory_space<vmem>>, vector<1x1x32xf32>
    %257 = vector.shape_cast %256 : vector<1x1x32xf32> to vector<1x32xf32>
    %258 = arith.mulf %255, %255 : vector<16x32xf32>
    %cst_108 = arith.constant dense<0.000000e+00> : vector<16xf32>
    %259 = vector.multi_reduction <add>, %258, %cst_108 [1] : vector<16x32xf32> to vector<16xf32>
    %260 = vector.shape_cast %259 : vector<16xf32> to vector<16x1xf32>
    %cst_109 = arith.constant 3.200000e+01 : f32
    %261 = vector.broadcast %cst_109 : f32 to vector<16x1xf32>
    %262 = arith.divf %260, %261 : vector<16x1xf32>
    %cst_110 = arith.constant 1.1920929E-7 : f32
    %263 = vector.broadcast %cst_110 : f32 to vector<16x1xf32>
    %264 = arith.addf %262, %263 : vector<16x1xf32>
    %265 = math.rsqrt %264 : vector<16x1xf32>
    %266 = vector.broadcast %265 : vector<16x1xf32> to vector<16x32xf32>
    %267 = arith.mulf %255, %266 : vector<16x32xf32>
    %268 = vector.broadcast %257 : vector<1x32xf32> to vector<16x32xf32>
    %269 = arith.mulf %267, %268 : vector<16x32xf32>
    %c1_111 = arith.constant 1 : index
    %c0_112 = arith.constant 0 : index
    %c0_113 = arith.constant 0 : index
    %270 = vector.load %arg5[%c1_111, %c0_112, %c0_113] : memref<2x32x128xf32, #tpu.memory_space<vmem>>, vector<1x32x128xf32>
    %271 = vector.shape_cast %270 : vector<1x32x128xf32> to vector<32x128xf32>
    %cst_114 = arith.constant dense<0.000000e+00> : vector<16x128xf32>
    %272 = tpu.matmul %269, %271, %cst_114 {dimension_numbers = #tpu.dot_dimension_numbers<[1], [0], [0], [1], [0, 0, 1, 1], [], []>} : vector<16x32xf32>, vector<32x128xf32>, vector<16x128xf32> -> vector<16x128xf32>
    %c1_115 = arith.constant 1 : index
    %c0_116 = arith.constant 0 : index
    %c0_117 = arith.constant 0 : index
    %273 = vector.load %arg6[%c1_115, %c0_116, %c0_117] : memref<2x32x128xf32, #tpu.memory_space<vmem>>, vector<1x32x128xf32>
    %274 = vector.shape_cast %273 : vector<1x32x128xf32> to vector<32x128xf32>
    %cst_118 = arith.constant dense<0.000000e+00> : vector<16x128xf32>
    %275 = tpu.matmul %269, %274, %cst_118 {dimension_numbers = #tpu.dot_dimension_numbers<[1], [0], [0], [1], [0, 0, 1, 1], [], []>} : vector<16x32xf32>, vector<32x128xf32>, vector<16x128xf32> -> vector<16x128xf32>
    %276 = arith.negf %272 : vector<16x128xf32>
    %277 = math.exp %276 : vector<16x128xf32>
    %cst_119 = arith.constant 1.000000e+00 : f32
    %278 = vector.broadcast %cst_119 : f32 to vector<16x128xf32>
    %279 = arith.addf %278, %277 : vector<16x128xf32>
    %280 = arith.divf %278, %279 : vector<16x128xf32>
    %281 = arith.mulf %272, %280 : vector<16x128xf32>
    %282 = arith.mulf %281, %275 : vector<16x128xf32>
    %c1_120 = arith.constant 1 : index
    %c0_121 = arith.constant 0 : index
    %c0_122 = arith.constant 0 : index
    %283 = vector.load %arg7[%c1_120, %c0_121, %c0_122] : memref<2x128x32xf32, #tpu.memory_space<vmem>>, vector<1x128x32xf32>
    %284 = vector.shape_cast %283 : vector<1x128x32xf32> to vector<128x32xf32>
    %cst_123 = arith.constant dense<0.000000e+00> : vector<16x32xf32>
    %285 = tpu.matmul %282, %284, %cst_123 {dimension_numbers = #tpu.dot_dimension_numbers<[1], [0], [0], [1], [0, 0, 1, 1], [], []>} : vector<16x128xf32>, vector<128x32xf32>, vector<16x32xf32> -> vector<16x32xf32>
    %286 = arith.addf %255, %285 : vector<16x32xf32>
    %c0_124 = arith.constant 0 : index
    %c0_125 = arith.constant 0 : index
    %287 = vector.load %arg10[%c0_124, %c0_125] : memref<32x64xf32, #tpu.memory_space<vmem>>, vector<32x64xf32>
    %cst_126 = arith.constant dense<0.000000e+00> : vector<16x64xf32>
    %288 = tpu.matmul %286, %287, %cst_126 {dimension_numbers = #tpu.dot_dimension_numbers<[1], [0], [0], [1], [0, 0, 1, 1], [], []>} : vector<16x32xf32>, vector<32x64xf32>, vector<16x64xf32> -> vector<16x64xf32>
    %c0_127 = arith.constant 0 : index
    %c0_128 = arith.constant 0 : index
    %289 = vector.load %arg11[%c0_127, %c0_128] : memref<1x64xf32, #tpu.memory_space<vmem>>, vector<1x64xf32>
    %290 = vector.broadcast %289 : vector<1x64xf32> to vector<16x64xf32>
    %291 = arith.addf %288, %290 : vector<16x64xf32>
    %c0_129 = arith.constant 0 : index
    %c0_130 = arith.constant 0 : index
    %292 = vector.load %arg12[%c0_129, %c0_130] : memref<16x64xf32, #tpu.memory_space<vmem>>, vector<16x64xf32>
    tpu.vector_store %arg12[%c0_129, %c0_130], %291 {strides = array<i32>} : memref<16x64xf32, #tpu.memory_space<vmem>>, vector<16x64xf32>,
    return
  }
}

</mosaic_0001>

<bundles_post_ra>
// kernel: llama_forward.1
= control target key start
LH: loop header
LB: loop body
LE: loop exit
PB: predicated region body
PF: predicated region fallthrough
CT: control target
= control target key end

     0   :  { %v5181_v2 = vmov 0   ;;  %s6031_s0 = inlined_call_operand.vmem [shape: s32[16,1], index: 0, kind: input, shape index: {}]   ;;  %s6032_s1 = inlined_call_operand.vmem [shape: f32[64,32], index: 1, kind: input, shape index: {}]   ;;  %s6033_s2 = inlined_call_operand.vmem [shape: f32[2,32,128], index: 2, kind: input, shape index: {}]   ;;  %s6034_s3 = inlined_call_operand.vmem [shape: f32[2,64,64], index: 3, kind: input, shape index: {}]   ;;  %s6035_s4 = inlined_call_operand.vmem [shape: f32[2,64,32], index: 4, kind: input, shape index: {}]   ;;  %s6036_s5 = inlined_call_operand.vmem [shape: f32[2,32,128], index: 5, kind: input, shape index: {}]   ;;  %s6037_s6 = inlined_call_operand.vmem [shape: f32[2,32,128], index: 6, kind: input, shape index: {}]   ;;  %s6038_s7 = inlined_call_operand.vmem [shape: f32[2,128,32], index: 7, kind: input, shape index: {}]   ;;  %s6039_s8 = inlined_call_operand.vmem [shape: f32[2,1,32], index: 8, kind: input, shape index: {}]   ;;  %s6040_s9 = inlined_call_operand.vmem [shape: f32[2,1,32], index: 9, kind: input, shape index: {}]   ;;  %s6041_s10 = inlined_call_operand.vmem [shape: f32[32,64], index: 10, kind: input, shape index: {}]   ;;  %s6042_s11 = inlined_call_operand.vmem [shape: f32[1,64], index: 11, kind: input, shape index: {}]   ;;  %s6043_s12 = inlined_call_operand.hbm [shape: f32[16,64], index: 12, kind: output, shape index: {}]  }
   0x1   :  { %v42_v0 = vld [vmem:[%s6031_s0] sm:$0xff]  ;;  %5060 = vset.pattern.permute.xlu0 %v5181_v2  ;;  %v59_v3 = vld [vmem:[%s6032_s1 + $0x8] sm:$0xff]  ;;  %v60_v4 = vld [vmem:[%s6032_s1 + $0x10] sm:$0xff] }
   0x2   :  { %v58_v1 = vld [vmem:[%s6032_s1] sm:$0xff]  ;;  %v61_v5 = vld [vmem:[%s6032_s1 + $0x18] sm:$0xff]  ;;  %47 = vperm.xlu0 %5060, %v42_v0   ;;  %v43_v6 = vld [vmem:[%s6031_s0 + $0x8] sm:$0xff] }
   0x3   :  { %v4847_v7 = vpack.c.bf16 %v59_v3, %v58_v1  ;;  %v4851_v8 = vpack.c.bf16 %v61_v5, %v60_v4  ;;  %v62_v9 = vld [vmem:[%s6032_s1 + $0x20] sm:$0xff]  ;;  %v63_v10 = vld [vmem:[%s6032_s1 + $0x28] sm:$0xff] }
   0x4   :  { %17 = vsyncpa [#allocation3], 0  ;;  %v5182_v11 = vmov 0.0   ;;  %v4855_v12 = vpack.c.bf16 %v63_v10, %v62_v9  ;;  %v64_v13 = vld [vmem:[%s6032_s1 + $0x30] sm:$0xff]  ;;  %v65_v14 = vld [vmem:[%s6032_s1 + $0x38] sm:$0xff]  ;;  %v44_v16 = vlaneseq  ;;  %vm66_vm0 = vcmask 523264  }
   0x5   :  { %4848 = vmatprep.subr.bf16.mxu1 %v4847_v7  ;;  %4475 = vmatprep.subr.mxu0 %v5182_v11  ;;  %v4859_v15 = vpack.c.bf16 %v65_v14, %v64_v13  ;;  %vm154_vm3 = vcmask 261120   ;;  %v178_v28 = vld [vmem:[%s6033_s2] sm:$0xff]  ;;  %v179_v29 = vld [vmem:[%s6033_s2 + $0x8] sm:$0xff]  ;;  %v180_v30 = vld [vmem:[%s6033_s2 + $0x10] sm:$0xff]  ;;  %vm5183_vm4 = vmmov 0   ;;  %s5184_s13 = smov 96  }
   0x6   :  { %4850 = vmatpush3.bf16.msra.mxu1 %v4847_v7  ;;  %50 = vperm.xlu0 %5060, %v43_v6   ;;  %v5291_v17 = vand.u32 127, %v44_v16  ;;  %v4863_v31 = vpack.c.bf16 %v179_v29, %v178_v28  ;;  %v181_v32 = vld [vmem:[%s6033_s2 + $0x18] sm:$0xff]  ;;  %v4128_v41 = vld [vmem:[%s6039_s8] ss:$0 sm:$0xff]  ;;  %vm266_vm5 = vcmask 130048   ;;  %v149_v51 = vshrl.u32 %v44_v16, 7 }
   0x7   :  { %4852 = vmatprep.subr.bf16.mxu1 %v4851_v8  ;;  %v4867_v33 = vpack.c.bf16 %v181_v32, %v180_v30  ;;  %4477 = vmatprep.mubr.msk.f32.mxu0 %vm5183_vm4, %v5182_v11  ;;  %vm424_vm7 = vcmask 64512   ;;  %s5185_s14 = smov 80   ;;  %s5186_s15 = smov 112   ;;  %vm1601_vm8 = vcmask 392192  }
   0x8   :  { %vm5358_vm6 = vcmp.le.s32.totalorder %v5291_v17, %v149_v51  ;;  %s5187_s16 = smov 32   ;;  %s5188_s17 = smov 64  }
   0x9   :  { %s5189_s18 = smov 16   ;;  %s5190_s0 = smov 48  }
   0xa   :  { %4854 = vmatpush3.bf16.msra.mxu1 %v4851_v8  ;;  %s5191_s24 = smov [#allocation2]  }
   0xb   :  { %4856 = vmatprep.subr.bf16.mxu1 %v4855_v12  ;;  %s4113_s25 = sshll.u32 %s5191_s24, 4  ;;  %s4114_s25 = int_to_ptr.vmem [resolvable:$true] %s4113_s25 }
   0xc   :  { %p5162_p1 = scmp.lt.s32.totalorder %s4114_s25, %s4114_s25 }
   0xe   :  { %4858 = vmatpush3.bf16.msra.mxu1 %v4855_v12 }
   0xf   :  { %4860 = vmatprep.subr.bf16.mxu1 %v4859_v15 }
  0x12   :  { %4862 = vmatpush3.bf16.msra.mxu1 %v4859_v15 }
  0x13   :  { %4864 = vmatprep.subr.bf16.mxu1 %v4863_v31 }
  0x81   :  { %v48_v18 = vpop.permute.xlu0 %47 }
  0x82   :  { %vm52_vm1 = vcmp.eq.s32.totalorder %v48_v18, %v5291_v17 }
  0x83   :  { %v4124_v19 = vsel %vm52_vm1, 1.0, %v5182_v11 }
  0x84   :  { %4461 = vmatprep.mubr.msk.f32.mxu1 %vm66_vm0, %v4124_v19 }
  0x85   :  { %v51_v20 = vpop.permute.xlu0 %50 }
  0x86   :  { %vm53_vm2 = vcmp.eq.s32.totalorder %v51_v20, %v5291_v17 }
  0x87   :  { %v4125_v21 = vsel %vm53_vm2, 1.0, %v5182_v11 }
  0x88   :  { %4462 = vmatmul.mubr.msk.f32.vlgmr.msra.gmra.mrb[0].mxu1 %vm66_vm0, %v4125_v21 }
  0x89   :  { %4866 = vmatpush3.bf16.msra.mxu1 %v4863_v31 }
  0x8a   :  { %4868 = vmatprep.subr.bf16.mxu1 %v4867_v33 }
  0x8d   :  { %4870 = vmatpush3.bf16.msra.mxu1 %v4867_v33 }
  0x8e   :  { %4480 = vmatprep.subr.mxu1 %v5182_v11 }
 0x15b   :  { %v5299_v22 = vpop.f32.mrb[0].mxu1 }
 0x15c   :  { %v5301_v23 = vpop.f32.mrb[1].mxu1  ;;  %v153_v26 = vmul.f32 %v5299_v22, %v5299_v22 }
 0x15d   :  { %v152_v24 = vmul.f32 %v5301_v23, %v5301_v23 }
 0x15e   :  { %v158_v27 = vsel %vm154_vm3, %v153_v26, 0.0 }
 0x15f   :  { %v155_v25 = vsel %vm154_vm3, %v152_v24, 0.0 }
 0x160   :  { %156 = vadd.xlane.f32.xlu1 %v155_v25 }
 0x164   :  { %159 = vadd.xlane.f32.xlu1 %v158_v27 }
 0x1ed   :  { %v157_v34 = vpop.xlane.xlu1 %156 }
 0x1ee   :  { %v162_v35 = vmul.f32 0.03125, %v157_v34 }
 0x1f0   :  { %v164_v36 = vadd.f32 1.1920929e-07, %v162_v35 }
 0x1f1   :  { %v160_v37 = vpop.xlane.xlu1 %159 }
 0x1f2   :  { %5061 = vrsqrt.f32 %v164_v36  ;;  %v163_v38 = vmul.f32 0.03125, %v160_v37 }
 0x1f4   :  { %v165_v39 = vadd.f32 1.1920929e-07, %v163_v38 }
 0x1f6   :  { %5063 = vrsqrt.f32 %v165_v39 }
 0x1fc   :  { %v5062_v40 = vpop.eup %5061 }
 0x1fd   :  { %v168_v42 = vmul.f32 %v5062_v40, %v5301_v23 }
 0x1ff   :  { %v176_v43 = vmul.f32 %v4128_v41, %v168_v42 }
 0x200   :  { %v5064_v44 = vpop.eup %5063 }
 0x201   :  { %v169_v45 = vmul.f32 %v5064_v44, %v5299_v22  ;;  %4472 = vmatprep.mubr.msk.f32.mxu1 %vm154_vm3, %v176_v43 }
 0x203   :  { %v177_v46 = vmul.f32 %v4128_v41, %v169_v45 }
 0x205   :  { %4473 = vmatmul.mubr.msk.f32.vlgmr.msra.gmra.mrb[2].mxu1 %vm154_vm3, %v177_v46 }
 0x206   :  { %4482 = vmatprep.mubr.msk.f32.mxu1 %vm5183_vm4, %v5182_v11 }
 0x2d8   :  { %v5333_v47 = vpop.f32.mrb[2].mxu1 }
 0x2d9   :  { %342 = vrot.lane.b32.xlu1 %v5333_v47, %s5184_s13  ;;  %v5337_v48 = vpop.f32.mrb[3].mxu1 }
 0x2da   :  { %264 = vrot.lane.b32.xlu0 %v5337_v48, %s5184_s13 }
 0x34b   :  { %v343_v49 = vpop.permute.xlu1 %342 }
 0x34c   :  { %4481 = vmatpush3.xpose.msk.msra.mxu1 %vm266_vm5, %v343_v49  ;;  %v5342_v50 = vpop.permute.xlu0 %264 }
 0x34d   :  { %4476 = vmatpush3.xpose.msk.msra.mxu0 %vm266_vm5, %v5342_v50  ;;  %4490 = vmatprep.subr.mxu1 %v5182_v11 }
 0x34e   :  { %4485 = vmatprep.subr.mxu0 %v5182_v11 }
 0x34f   :  { %4483 = vmatmul.mubr.msk.f32.vlgmr.msra.gmra.mrb[4].mxu1 %vm266_vm5, %v5333_v47 }
 0x350   :  { %4478 = vmatmul.mubr.msk.f32.vlgmr.msra.gmra.mrb[0].mxu0 %vm266_vm5, %v5337_v48  ;;  %4492 = vmatprep.mubr.msk.f32.mxu1 %vm5183_vm4, %v5182_v11 }
 0x351   :  { %4487 = vmatprep.mubr.msk.f32.mxu0 %vm5183_vm4, %v5182_v11 }
 0x422   :  { %v414_v53 = vpop.f32.mrb[4].mxu1 }
 0x423   :  { %v419_v54 = vmul.f32 0.25, %v414_v53  ;;  %v337_v55 = vpop.f32.mrb[0].mxu0  ;;  %v4484_v56 = vpop.f32.mrb[5].mxu1 }
 0x424   :  { %v418_v57 = vmul.f32 0.25, %v337_v55  ;;  %v4479_v58 = vpop.f32.mrb[1].mxu0 }
 0x425   :  { %v423_v59 = vsel %vm5358_vm6, %v419_v54, -inf }
 0x426   :  { %v428_v60 = vsel %vm424_vm7, %v423_v59, -inf  ;;  %v422_v61 = vsel %vm5358_vm6, %v418_v57, -inf }
 0x427   :  { %429 = vmax.xlane.f32.xlu1 %v428_v60  ;;  %v425_v62 = vsel %vm424_vm7, %v422_v61, -inf }
 0x428   :  { %426 = vmax.xlane.f32.xlu0 %v425_v62 }
 0x438   :  { %523 = vrot.lane.b32.xlu1 %v5333_v47, %s5185_s14 }
 0x43e   :  { %447 = vrot.lane.b32.xlu0 %v5337_v48, %s5185_s14 }
 0x4b4   :  { %v430_v63 = vpop.xlane.xlu1 %429 }
 0x4b5   :  { %v432_v0 = vsub.f32 %v423_v59, %v430_v63  ;;  %v427_v1 = vpop.xlane.xlu0 %426 }
 0x4b6   :  { %v431_v2 = vsub.f32 %v422_v61, %v427_v1 }
 0x4b7   :  { %v435_v3 = vmul.f32 1.442695, %v432_v0 }
 0x4b8   :  { %v433_v4 = vmul.f32 1.442695, %v431_v2  ;;  %v524_v5 = vpop.permute.xlu1 %523 }
 0x4b9   :  { %5065 = vpow2.f32 %v435_v3  ;;  %v448_v6 = vpop.permute.xlu0 %447  ;;  %4491 = vmatpush3.msra.mxu1 %v524_v5 }
 0x4ba   :  { %4486 = vmatpush3.msra.mxu0 %v448_v6  ;;  %4500 = vmatprep.subr.mxu1 %v5182_v11  ;;  %5067 = vpow2.f32 %v433_v4 }
 0x4bb   :  { %4495 = vmatprep.subr.mxu0 %v5182_v11 }
 0x4c3   :  { %v5066_v7 = vpop.eup %5065 }
 0x4c4   :  { %v440_v8 = vsel %vm424_vm7, %v5066_v7, 0.0  ;;  %v5068_v9 = vpop.eup %5067 }
 0x4c5   :  { %441 = vadd.xlane.f32.xlu0 %v440_v8  ;;  %v437_v10 = vsel %vm424_vm7, %v5068_v9, 0.0 }
 0x4c9   :  { %438 = vadd.xlane.f32.xlu0 %v437_v10 }
 0x4df   :  { %599 = vrot.lane.b32.xlu0 %v5337_v48, %s5186_s15 }
 0x4e3   :  { %673 = vrot.lane.b32.xlu0 %v5333_v47, %s5186_s15 }
 0x552   :  { %v442_v12 = vpop.xlane.xlu0 %441 }
 0x553   :  { %5069 = vrcp.f32 %v442_v12 }
 0x556   :  { %v439_v13 = vpop.xlane.xlu0 %438 }
 0x557   :  { %5071 = vrcp.f32 %v439_v13 }
 0x55a   :  { %v600_v15 = vpop.permute.xlu0 %599 }
 0x55d   :  { %v5070_v14 = vpop.eup %5069 }
 0x55e   :  { %v446_v16 = vmul.f32 %v5070_v14, %v5066_v7  ;;  %v674_v19 = vpop.permute.xlu0 %673 }
 0x560   :  { %4493 = vmatmul.mubr.msk.f32.vlgmr.msra.gmra.mrb[6].mxu1 %vm424_vm7, %v446_v16 }
 0x561   :  { %v5072_v17 = vpop.eup %5071  ;;  %4501 = vmatpush3.xpose.msk.msra.mxu1 %vm266_vm5, %v343_v49  ;;  %4502 = vmatprep.mubr.msk.f32.mxu1 %vm5183_vm4, %v5182_v11 }
 0x562   :  { %v445_v18 = vmul.f32 %v5072_v17, %v5068_v9  ;;  %4510 = vmatprep.subr.mxu1 %v5182_v11 }
 0x564   :  { %4488 = vmatmul.mubr.msk.f32.vlgmr.msra.gmra.mrb[2].mxu0 %vm424_vm7, %v445_v18  ;;  %4503 = vmatmul.mubr.msk.f32.vlgmr.msra.gmra.mrb[8].mxu1 %vm266_vm5, %v674_v19 }
 0x565   :  { %4496 = vmatpush3.xpose.msk.msra.mxu0 %vm266_vm5, %v5342_v50  ;;  %4511 = vmatpush3.msra.mxu1 %v524_v5 }
 0x566   :  { %4497 = vmatprep.mubr.msk.f32.mxu0 %vm5183_vm4, %v5182_v11  ;;  %4505 = vmatprep.subr.mxu0 %v5182_v11 }
 0x567   :  { %4512 = vmatprep.mubr.msk.f32.mxu1 %vm5183_vm4, %v5182_v11  ;;  %4520 = vmatprep.subr.mxu1 %v5182_v11 }
 0x568   :  { %4498 = vmatmul.mubr.msk.f32.vlgmr.msra.gmra.mrb[4].mxu0 %vm266_vm5, %v600_v15 }
 0x569   :  { %4506 = vmatpush3.msra.mxu0 %v448_v6  ;;  %4507 = vmatprep.mubr.msk.f32.mxu0 %vm5183_vm4, %v5182_v11 }
 0x56a   :  { %4515 = vmatprep.subr.mxu0 %v5182_v11 }
 0x633   :  { %v5399_v20 = vpop.f32.mrb[6].mxu1 }
 0x634   :  { %v4494_v21 = vpop.f32.mrb[7].mxu1 }
 0x637   :  { %v5401_v24 = vpop.f32.mrb[2].mxu0  ;;  %v743_v25 = vpop.f32.mrb[8].mxu1 }
 0x638   :  { %v748_v26 = vmul.f32 0.25, %v743_v25  ;;  %v4489_v27 = vpop.f32.mrb[3].mxu0  ;;  %v4504_v28 = vpop.f32.mrb[9].mxu1 }
 0x63a   :  { %v750_v29 = vsel %vm5358_vm6, %v748_v26, -inf }
 0x63b   :  { %v669_v30 = vpop.f32.mrb[4].mxu0  ;;  %v754_v31 = vsel %vm424_vm7, %v750_v29, -inf }
 0x63c   :  { %v747_v32 = vmul.f32 0.25, %v669_v30  ;;  %v4499_v33 = vpop.f32.mrb[5].mxu0  ;;  %755 = vmax.xlane.f32.xlu0 %v754_v31 }
 0x63e   :  { %v749_v34 = vsel %vm5358_vm6, %v747_v32, -inf }
 0x63f   :  { %v751_v35 = vsel %vm424_vm7, %v749_v34, -inf }
 0x640   :  { %752 = vmax.xlane.f32.xlu1 %v751_v35 }
 0x6c9   :  { %v756_v36 = vpop.xlane.xlu0 %755 }
 0x6ca   :  { %v758_v37 = vsub.f32 %v750_v29, %v756_v36 }
 0x6cc   :  { %v761_v38 = vmul.f32 1.442695, %v758_v37 }
 0x6cd   :  { %v753_v39 = vpop.xlane.xlu1 %752 }
 0x6ce   :  { %5073 = vpow2.f32 %v761_v38  ;;  %v757_v40 = vsub.f32 %v749_v34, %v753_v39 }
 0x6d0   :  { %v759_v41 = vmul.f32 1.442695, %v757_v40 }
 0x6d2   :  { %5075 = vpow2.f32 %v759_v41 }
 0x6d8   :  { %v5074_v42 = vpop.eup %5073 }
 0x6d9   :  { %v766_v43 = vsel %vm424_vm7, %v5074_v42, 0.0 }
 0x6da   :  { %767 = vadd.xlane.f32.xlu1 %v766_v43 }
 0x6dc   :  { %v5076_v44 = vpop.eup %5075 }
 0x6dd   :  { %v763_v45 = vsel %vm424_vm7, %v5076_v44, 0.0 }
 0x6de   :  { %764 = vadd.xlane.f32.xlu0 %v763_v45 }
 0x6eb   :  { %999 = vrot.lane.b32.xlu1 %v5333_v47, %s5187_s16 }
 0x6ef   :  { %919 = vrot.lane.b32.xlu1 %v5337_v48, %s5188_s17 }
 0x6f4   :  { %921 = vrot.lane.b32.xlu0 %v5337_v48, %s5187_s16 }
 0x6f8   :  { %997 = vrot.lane.b32.xlu0 %v5333_v47, %s5188_s17 }
 0x767   :  { %v768_v46 = vpop.xlane.xlu1 %767 }
 0x768   :  { %5077 = vrcp.f32 %v768_v46 }
 0x76b   :  { %v765_v49 = vpop.xlane.xlu0 %764  ;;  %v5421_v54 = vpop.permute.xlu1 %999 }
 0x76c   :  { %5079 = vrcp.f32 %v765_v49 }
 0x76f   :  { %v5419_v51 = vpop.permute.xlu0 %921  ;;  %v920_v58 = vpop.permute.xlu1 %919 }
 0x772   :  { %v5078_v50 = vpop.eup %5077 }
 0x773   :  { %v772_v53 = vmul.f32 %v5078_v50, %v5074_v42  ;;  %v998_v57 = vpop.permute.xlu0 %997 }
 0x775   :  { %4513 = vmatmul.mubr.msk.f32.vlgmr.msra.gmra.mrb[10].mxu1 %vm424_vm7, %v772_v53 }
 0x776   :  { %v5080_v55 = vpop.eup %5079  ;;  %4521 = vmatpush3.xpose.msk.msra.mxu1 %vm266_vm5, %v5421_v54  ;;  %4522 = vmatprep.mubr.msk.f32.mxu1 %vm5183_vm4, %v5182_v11 }
 0x777   :  { %v771_v56 = vmul.f32 %v5080_v55, %v5076_v44  ;;  %4530 = vmatprep.subr.mxu1 %v5182_v11 }
 0x779   :  { %4508 = vmatmul.mubr.msk.f32.vlgmr.msra.gmra.mrb[6].mxu0 %vm424_vm7, %v771_v56  ;;  %4523 = vmatmul.mubr.msk.f32.vlgmr.msra.gmra.mrb[12].mxu1 %vm266_vm5, %v998_v57 }
 0x77a   :  { %4516 = vmatpush3.xpose.msk.msra.mxu0 %vm266_vm5, %v5419_v51  ;;  %4517 = vmatprep.mubr.msk.f32.mxu0 %vm5183_vm4, %v5182_v11 }
 0x77b   :  { %4525 = vmatprep.subr.mxu0 %v5182_v11  ;;  %4532 = vmatprep.mubr.msk.f32.mxu1 %vm5183_vm4, %v5182_v11 }
 0x77d   :  { %4518 = vmatmul.mubr.msk.f32.vlgmr.msra.gmra.mrb[8].mxu0 %vm266_vm5, %v920_v58 }
 0x77e   :  { %4527 = vmatprep.mubr.msk.f32.mxu0 %vm5183_vm4, %v5182_v11 }
 0x848   :  { %v5441_v59 = vpop.f32.mrb[10].mxu1 }
 0x849   :  { %v4514_v60 = vpop.f32.mrb[11].mxu1 }
 0x84c   :  { %v5443_v61 = vpop.f32.mrb[6].mxu0  ;;  %v1071_v62 = vpop.f32.mrb[12].mxu1 }
 0x84d   :  { %v1076_v63 = vmul.f32 0.25, %v1071_v62  ;;  %v4509_v0 = vpop.f32.mrb[7].mxu0  ;;  %v4524_v1 = vpop.f32.mrb[13].mxu1 }
 0x84f   :  { %v1078_v2 = vsel %vm5358_vm6, %v1076_v63, -inf }
 0x850   :  { %v993_v3 = vpop.f32.mrb[8].mxu0  ;;  %v1082_v4 = vsel %vm424_vm7, %v1078_v2, -inf }
 0x851   :  { %v1075_v5 = vmul.f32 0.25, %v993_v3  ;;  %v4519_v6 = vpop.f32.mrb[9].mxu0  ;;  %1083 = vmax.xlane.f32.xlu0 %v1082_v4  ;;  %v1606_v3 = vld [vmem:[%s6034_s3 + $0x10] sm:$0xff] }
 0x853   :  { %v1077_v7 = vsel %vm5358_vm6, %v1075_v5, -inf  ;;  %v1607_v5 = vld [vmem:[%s6034_s3 + $0x18] sm:$0xff] }
 0x854   :  { %v1079_v8 = vsel %vm424_vm7, %v1077_v7, -inf  ;;  %v4875_v6 = vpack.c.bf16 %v1607_v5, %v1606_v3 }
 0x855   :  { %1080 = vmax.xlane.f32.xlu1 %v1079_v8  ;;  %v1609_v8 = vld [vmem:[%s6034_s3 + $0x28] sm:$0xff] }
 0x8de   :  { %v1084_v9 = vpop.xlane.xlu0 %1083 }
 0x8df   :  { %v1086_v10 = vsub.f32 %v1078_v2, %v1084_v9 }
 0x8e1   :  { %v1089_v12 = vmul.f32 1.442695, %v1086_v10  ;;  %v1610_v10 = vld [vmem:[%s6034_s3 + $0x30] sm:$0xff] }
 0x8e2   :  { %v1081_v13 = vpop.xlane.xlu1 %1080 }
 0x8e3   :  { %5081 = vpow2.f32 %v1089_v12  ;;  %v1085_v14 = vsub.f32 %v1077_v7, %v1081_v13  ;;  %v1608_v7 = vld [vmem:[%s6034_s3 + $0x20] sm:$0xff]  ;;  %v1611_v12 = vld [vmem:[%s6034_s3 + $0x38] sm:$0xff] }
 0x8e4   :  { %v4879_v9 = vpack.c.bf16 %v1609_v8, %v1608_v7  ;;  %v4883_v13 = vpack.c.bf16 %v1611_v12, %v1610_v10 }
 0x8e5   :  { %v1087_v15 = vmul.f32 1.442695, %v1085_v14  ;;  %v1693_v14 = vld [vmem:[%s6035_s4] sm:$0xff] }
 0x8e7   :  { %5083 = vpow2.f32 %v1087_v15  ;;  %v1694_v15 = vld [vmem:[%s6035_s4 + $0x8] sm:$0xff] }
 0x8ed   :  { %v5082_v16 = vpop.eup %5081 }
 0x8ee   :  { %v1094_v17 = vsel %vm424_vm7, %v5082_v16, 0.0 }
 0x8ef   :  { %1095 = vadd.xlane.f32.xlu1 %v1094_v17  ;;  %v4887_v17 = vpack.c.bf16 %v1694_v15, %v1693_v14  ;;  %v1989_v15 = vld [vmem:[%s6038_s7] sm:$0xff] }
 0x8f1   :  { %v5084_v18 = vpop.eup %5083 }
 0x8f2   :  { %v1091_v19 = vsel %vm424_vm7, %v5084_v18, 0.0 }
 0x8f3   :  { %1092 = vadd.xlane.f32.xlu0 %v1091_v19 }
 0x900   :  { %1177 = vrot.lane.b32.xlu1 %v5333_v47, %s5189_s18 }
 0x904   :  { %1253 = vrot.lane.b32.xlu1 %v5337_v48, %s5190_s0 }
 0x909   :  { %1101 = vrot.lane.b32.xlu0 %v5337_v48, %s5189_s18 }
 0x90d   :  { %1327 = vrot.lane.b32.xlu0 %v5333_v47, %s5190_s0 }
 0x97c   :  { %v1096_v21 = vpop.xlane.xlu1 %1095 }
 0x97d   :  { %5085 = vrcp.f32 %v1096_v21  ;;  %v1697_v21 = vld [vmem:[%s6035_s4 + $0x20] sm:$0xff] }
 0x980   :  { %v1178_v25 = vpop.permute.xlu1 %1177  ;;  %v1093_v26 = vpop.xlane.xlu0 %1092 }
 0x981   :  { %5087 = vrcp.f32 %v1093_v26  ;;  %4531 = vmatpush3.msra.mxu1 %v1178_v25 }
 0x982   :  { %4540 = vmatprep.subr.mxu1 %v5182_v11 }
 0x984   :  { %v1102_v27 = vpop.permute.xlu0 %1101  ;;  %v1254_v31 = vpop.permute.xlu1 %1253 }
 0x985   :  { %4526 = vmatpush3.msra.mxu0 %v1102_v27 }
 0x986   :  { %4535 = vmatprep.subr.mxu0 %v5182_v11 }
 0x987   :  { %v5086_v28 = vpop.eup %5085 }
 0x988   :  { %v1100_v29 = vmul.f32 %v5086_v28, %v5082_v16  ;;  %v1328_v30 = vpop.permute.xlu0 %1327  ;;  %v1695_v16 = vld [vmem:[%s6035_s4 + $0x10] sm:$0xff] }
 0x989   :  { %v1699_v28 = vld [vmem:[%s6035_s4 + $0x30] sm:$0xff] }
 0x98a   :  { %4533 = vmatmul.mubr.msk.f32.vlgmr.msra.gmra.mrb[14].mxu1 %vm424_vm7, %v1100_v29  ;;  %v1700_v29 = vld [vmem:[%s6035_s4 + $0x38] sm:$0xff] }
 0x98b   :  { %v5088_v48 = vpop.eup %5087  ;;  %4541 = vmatpush3.xpose.msk.msra.mxu1 %vm266_vm5, %v5421_v54  ;;  %4542 = vmatprep.mubr.msk.f32.mxu1 %vm5183_vm4, %v5182_v11 }
 0x98c   :  { %v1099_v47 = vmul.f32 %v5088_v48, %v5084_v18  ;;  %4550 = vmatprep.subr.mxu1 %v5182_v11  ;;  %v1696_v18 = vld [vmem:[%s6035_s4 + $0x18] sm:$0xff] }
 0x98d   :  { %v4891_v19 = vpack.c.bf16 %v1696_v18, %v1695_v16  ;;  %v1990_v16 = vld [vmem:[%s6038_s7 + $0x8] sm:$0xff]  ;;  %v1991_v18 = vld [vmem:[%s6038_s7 + $0x10] sm:$0xff] }
 0x98e   :  { %4528 = vmatmul.mubr.msk.f32.vlgmr.msra.gmra.mrb[10].mxu0 %vm424_vm7, %v1099_v47  ;;  %4543 = vmatmul.mubr.msk.f32.vlgmr.msra.gmra.mrb[16].mxu1 %vm266_vm5, %v1328_v30  ;;  %v4899_v47 = vpack.c.bf16 %v1700_v29, %v1699_v28  ;;  %v1995_v28 = vld [vmem:[%s6038_s7 + $0x30] sm:$0xff]  ;;  %v1996_v29 = vld [vmem:[%s6038_s7 + $0x38] sm:$0xff] }
 0x98f   :  { %4536 = vmatpush3.xpose.msk.msra.mxu0 %vm266_vm5, %v5419_v51  ;;  %4551 = vmatpush3.msra.mxu1 %v1178_v25  ;;  %v1698_v25 = vld [vmem:[%s6035_s4 + $0x28] sm:$0xff] }
 0x990   :  { %4537 = vmatprep.mubr.msk.f32.mxu0 %vm5183_vm4, %v5182_v11  ;;  %4545 = vmatprep.subr.mxu0 %v5182_v11  ;;  %v4895_v26 = vpack.c.bf16 %v1698_v25, %v1697_v21  ;;  %v1993_v25 = vld [vmem:[%s6038_s7 + $0x20] sm:$0xff] }
 0x991   :  { %4552 = vmatprep.mubr.msk.f32.mxu1 %vm5183_vm4, %v5182_v11  ;;  %4888 = vmatprep.subr.bf16.mxu1 %v4887_v17 }
 0x992   :  { %4538 = vmatmul.mubr.msk.f32.vlgmr.msra.gmra.mrb[12].mxu0 %vm266_vm5, %v1254_v31 }
 0x993   :  { %4546 = vmatpush3.msra.mxu0 %v1102_v27  ;;  %4547 = vmatprep.mubr.msk.f32.mxu0 %vm5183_vm4, %v5182_v11 }
 0xa5d   :  { %v1249_v32 = vpop.f32.mrb[14].mxu1 }
 0xa5e   :  { %v4534_v33 = vpop.f32.mrb[15].mxu1 }
 0xa61   :  { %v1173_v34 = vpop.f32.mrb[10].mxu0  ;;  %v1397_v35 = vpop.f32.mrb[16].mxu1 }
 0xa62   :  { %v1402_v36 = vmul.f32 0.25, %v1397_v35  ;;  %v4529_v37 = vpop.f32.mrb[11].mxu0  ;;  %v4544_v38 = vpop.f32.mrb[17].mxu1 }
 0xa64   :  { %v1404_v39 = vsel %vm5358_vm6, %v1402_v36, -inf }
 0xa65   :  { %v1323_v40 = vpop.f32.mrb[12].mxu0  ;;  %v1408_v41 = vsel %vm424_vm7, %v1404_v39, -inf }
 0xa66   :  { %v1401_v42 = vmul.f32 0.25, %v1323_v40  ;;  %v4539_v43 = vpop.f32.mrb[13].mxu0  ;;  %1409 = vmax.xlane.f32.xlu0 %v1408_v41 }
 0xa68   :  { %v1403_v44 = vsel %vm5358_vm6, %v1401_v42, -inf }
 0xa69   :  { %v1405_v45 = vsel %vm424_vm7, %v1403_v44, -inf }
 0xa6a   :  { %1406 = vmax.xlane.f32.xlu1 %v1405_v45 }
 0xaf3   :  { %v1410_v46 = vpop.xlane.xlu0 %1409 }
 0xaf4   :  { %v1412_v49 = vsub.f32 %v1404_v39, %v1410_v46 }
 0xaf6   :  { %v1415_v50 = vmul.f32 1.442695, %v1412_v49 }
 0xaf7   :  { %v1407_v51 = vpop.xlane.xlu1 %1406 }
 0xaf8   :  { %5089 = vpow2.f32 %v1415_v50  ;;  %v1411_v53 = vsub.f32 %v1403_v44, %v1407_v51 }
 0xafa   :  { %v1413_v54 = vmul.f32 1.442695, %v1411_v53 }
 0xafc   :  { %5091 = vpow2.f32 %v1413_v54 }
 0xb02   :  { %v5090_v55 = vpop.eup %5089 }
 0xb03   :  { %v1420_v56 = vsel %vm424_vm7, %v5090_v55, 0.0 }
 0xb04   :  { %1421 = vadd.xlane.f32.xlu1 %v1420_v56 }
 0xb06   :  { %v5092_v57 = vpop.eup %5091 }
 0xb07   :  { %v1417_v58 = vsel %vm424_vm7, %v5092_v57, 0.0 }
 0xb08   :  { %1418 = vadd.xlane.f32.xlu0 %v1417_v58  ;;  %v1811_v58 = vld [vmem:[%s6036_s5 + $0x10] sm:$0xff] }
 0xb15   :  { %1577 = vrot.lane.b32.xlu1 %v5441_v59, %s5189_s18  ;;  %v1604_v59 = vld [vmem:[%s6034_s3] sm:$0xff] }
 0xb19   :  { %1583 = vrot.lane.b32.xlu1 %v1173_v34, %s5187_s16 }
 0xb1e   :  { %1575 = vrot.lane.b32.xlu0 %v5443_v61, %s5189_s18  ;;  %v1605_v61 = vld [vmem:[%s6034_s3 + $0x8] sm:$0xff] }
 0xb1f   :  { %v4871_v4 = vpack.c.bf16 %v1605_v61, %v1604_v59 }
 0xb21   :  { %4872 = vmatprep.subr.bf16.mxu0 %v4871_v4 }
 0xb22   :  { %1585 = vrot.lane.b32.xlu0 %v1249_v32, %s5187_s16 }
 0xb91   :  { %v1422_v60 = vpop.xlane.xlu1 %1421 }
 0xb92   :  { %5093 = vrcp.f32 %v1422_v60  ;;  %v1812_v60 = vld [vmem:[%s6036_s5 + $0x18] sm:$0xff] }
 0xb95   :  { %v1419_v62 = vpop.xlane.xlu0 %1418  ;;  %v1578_v33 = vpop.permute.xlu1 %1577 }
 0xb96   :  { %5095 = vrcp.f32 %v1419_v62  ;;  %v1598_v38 = vsel %vm266_vm5, %v5399_v20, %v1578_v33  ;;  %v2000_v33 = vld [vmem:[%s6038_s7 + $0x58] sm:$0xff] }
 0xb99   :  { %v1576_v32 = vpop.permute.xlu0 %1575  ;;  %v1584_v35 = vpop.permute.xlu1 %1583 }
 0xb9a   :  { %v1597_v36 = vsel %vm266_vm5, %v5401_v24, %v1576_v32  ;;  %v1999_v32 = vld [vmem:[%s6038_s7 + $0x50] sm:$0xff] }
 0xb9b   :  { %v1599_v40 = vsel %vm154_vm3, %v1597_v36, %v1584_v35  ;;  %v2001_v35 = vld [vmem:[%s6038_s7 + $0x60] sm:$0xff]  ;;  %v2002_v36 = vld [vmem:[%s6038_s7 + $0x68] sm:$0xff] }
 0xb9c   :  { %v5094_v63 = vpop.eup %5093 }
 0xb9d   :  { %v1426_v0 = vmul.f32 %v5094_v63, %v5090_v55  ;;  %v1586_v34 = vpop.permute.xlu0 %1585  ;;  %v1894_v55 = vld [vmem:[%s6037_s6] sm:$0xff]  ;;  %v4907_v63 = vpack.c.bf16 %v1812_v60, %v1811_v58 }
 0xb9e   :  { %v1600_v41 = vsel %vm154_vm3, %v1598_v38, %v1586_v34  ;;  %v4939_v34 = vpack.c.bf16 %v2000_v33, %v1999_v32  ;;  %v2003_v38 = vld [vmem:[%s6038_s7 + $0x70] sm:$0xff] }
 0xb9f   :  { %4553 = vmatmul.mubr.msk.f32.vlgmr.msra.gmra.mrb[18].mxu1 %vm424_vm7, %v1426_v0  ;;  %v1896_v0 = vld [vmem:[%s6037_s6 + $0x10] sm:$0xff] }
 0xba0   :  { %v5096_v1 = vpop.eup %5095  ;;  %4890 = vmatpush3.bf16.msra.mxu1 %v4887_v17  ;;  %v4919_v17 = vpack.c.bf16 %v1990_v16, %v1989_v15  ;;  %v4167_v15 = vld [vmem:[%s6039_s8 + $0x1] ss:$0 sm:$0xff] }
 0xba1   :  { %v1425_v2 = vmul.f32 %v5096_v1, %v5092_v57  ;;  %4892 = vmatprep.subr.bf16.mxu1 %v4891_v19  ;;  %v1895_v57 = vld [vmem:[%s6037_s6 + $0x8] sm:$0xff]  ;;  %v1897_v1 = vld [vmem:[%s6037_s6 + $0x18] sm:$0xff] }
 0xba2   :  { %v4911_v62 = vpack.c.bf16 %v1895_v57, %v1894_v55 }
 0xba3   :  { %4548 = vmatmul.mubr.msk.f32.vlgmr.msra.gmra.mrb[14].mxu0 %vm424_vm7, %v1425_v2  ;;  %v4915_v2 = vpack.c.bf16 %v1897_v1, %v1896_v0 }
 0xba4   :  { %4874 = vmatpush3.bf16.msra.mxu0 %v4871_v4  ;;  %4894 = vmatpush3.bf16.msra.mxu1 %v4891_v19  ;;  %v1992_v19 = vld [vmem:[%s6038_s7 + $0x18] sm:$0xff] }
 0xba5   :  { %4876 = vmatprep.subr.bf16.mxu0 %v4875_v6  ;;  %4896 = vmatprep.subr.bf16.mxu1 %v4895_v26  ;;  %v4923_v21 = vpack.c.bf16 %v1992_v19, %v1991_v18 }
 0xba8   :  { %4878 = vmatpush3.bf16.msra.mxu0 %v4875_v6  ;;  %4898 = vmatpush3.bf16.msra.mxu1 %v4895_v26  ;;  %v1994_v26 = vld [vmem:[%s6038_s7 + $0x28] sm:$0xff] }
 0xba9   :  { %4880 = vmatprep.subr.bf16.mxu0 %v4879_v9  ;;  %4900 = vmatprep.subr.bf16.mxu1 %v4899_v47 }
 0xbac   :  { %4882 = vmatpush3.bf16.msra.mxu0 %v4879_v9  ;;  %4902 = vmatpush3.bf16.msra.mxu1 %v4899_v47  ;;  %v4159_v9 = vld [vmem:[%s6040_s9] ss:$0 sm:$0xff] }
 0xbad   :  { %4884 = vmatprep.subr.bf16.mxu0 %v4883_v13  ;;  %4912 = vmatprep.subr.bf16.mxu1 %v4911_v62  ;;  %v1997_v47 = vld [vmem:[%s6038_s7 + $0x40] sm:$0xff] }
 0xbb0   :  { %4886 = vmatpush3.bf16.msra.mxu0 %v4883_v13 }
 0xc72   :  { %v1569_v27 = vpop.f32.mrb[18].mxu1 }
 0xc73   :  { %1593 = vrot.lane.b32.xlu0 %v1569_v27, %s5190_s0  ;;  %v4554_v48 = vpop.f32.mrb[19].mxu1  ;;  %v4927_v27 = vpack.c.bf16 %v1994_v26, %v1993_v25 }
 0xc74   :  { %v4931_v48 = vpack.c.bf16 %v1996_v29, %v1995_v28 }
 0xc76   :  { %v1496_v30 = vpop.f32.mrb[14].mxu0 }
 0xc77   :  { %1591 = vrot.lane.b32.xlu1 %v1496_v30, %s5190_s0  ;;  %v4549_v31 = vpop.f32.mrb[15].mxu0  ;;  %v1998_v30 = vld [vmem:[%s6038_s7 + $0x48] sm:$0xff] }
 0xc78   :  { %v4935_v31 = vpack.c.bf16 %v1998_v30, %v1997_v47 }
 0xce5   :  { %v1594_v37 = vpop.permute.xlu0 %1593 }
 0xce6   :  { %v1603_v43 = vsel %vm1601_vm8, %v1600_v41, %v1594_v37  ;;  %v4943_v37 = vpack.c.bf16 %v2002_v36, %v2001_v35 }
 0xce9   :  { %v1592_v39 = vpop.permute.xlu1 %1591 }
 0xcea   :  { %v1602_v42 = vsel %vm1601_vm8, %v1599_v40, %v1592_v39  ;;  %v2004_v39 = vld [vmem:[%s6038_s7 + $0x78] sm:$0xff] }
 0xceb   :  { %4571 = vmatprep.mubr.msk.f32.mxu0 %vm66_vm0, %v1602_v42  ;;  %v4947_v40 = vpack.c.bf16 %v2004_v39, %v2003_v38 }
 0xcec   :  { %4572 = vmatmul.mubr.msk.f32.vlgmr.msra.gmra.mrb[16].mxu0 %vm66_vm0, %v1603_v43 }
 0xdbf   :  { %v4573_v44 = vpop.f32.mrb[16].mxu0 }
 0xdc0   :  { %v1684_v24 = vpop.f32.mrb[17].mxu0 }
 0xdc1   :  { %4590 = vmatprep.mubr.msk.f32.mxu1 %vm66_vm0, %v1684_v24 }
 0xdc2   :  { %4591 = vmatmul.mubr.msk.f32.vlgmr.msra.gmra.mrb[20].mxu1 %vm66_vm0, %v4573_v44 }
 0xdc3   :  { %4914 = vmatpush3.bf16.msra.mxu1 %v4911_v62 }
 0xdc4   :  { %4916 = vmatprep.subr.bf16.mxu1 %v4915_v2 }
 0xdc7   :  { %4918 = vmatpush3.bf16.msra.mxu1 %v4915_v2 }
 0xe95   :  { %v4592_v20 = vpop.f32.mrb[20].mxu1 }
 0xe96   :  { %v5560_v45 = vadd.f32 %v4592_v20, %v5299_v22  ;;  %v1773_v46 = vpop.f32.mrb[21].mxu1  ;;  %v1809_v22 = vld [vmem:[%s6036_s5] sm:$0xff] }
 0xe97   :  { %v5563_v49 = vadd.f32 %v1773_v46, %v5301_v23  ;;  %v1810_v23 = vld [vmem:[%s6036_s5 + $0x8] sm:$0xff] }
 0xe98   :  { %v1786_v50 = vmul.f32 %v5560_v45, %v5560_v45  ;;  %v4903_v56 = vpack.c.bf16 %v1810_v23, %v1809_v22 }
 0xe99   :  { %v1785_v51 = vmul.f32 %v5563_v49, %v5563_v49 }
 0xe9a   :  { %v1790_v53 = vsel %vm154_vm3, %v1786_v50, 0.0  ;;  %4904 = vmatprep.subr.bf16.mxu0 %v4903_v56 }
 0xe9b   :  { %1791 = vadd.xlane.f32.xlu0 %v1790_v53  ;;  %v1787_v54 = vsel %vm154_vm3, %v1785_v51, 0.0  ;;  %4906 = vmatpush3.bf16.msra.mxu0 %v4903_v56 }
 0xe9c   :  { %1788 = vadd.xlane.f32.xlu1 %v1787_v54  ;;  %4908 = vmatprep.subr.bf16.mxu0 %v4907_v63 }
 0xe9f   :  { %4910 = vmatpush3.bf16.msra.mxu0 %v4907_v63 }
 0xea0   :  { %4920 = vmatprep.subr.bf16.mxu0 %v4919_v17 }
 0xf28   :  { %v1792_v59 = vpop.xlane.xlu0 %1791 }
 0xf29   :  { %v1794_v61 = vmul.f32 0.03125, %v1792_v59  ;;  %v1789_v3 = vpop.xlane.xlu1 %1788 }
 0xf2a   :  { %v1793_v4 = vmul.f32 0.03125, %v1789_v3 }
 0xf2b   :  { %v1796_v5 = vadd.f32 1.1920929e-07, %v1794_v61  ;;  %v4170_v61 = vld [vmem:[%s6033_s2 + $0x30] sm:$0xff] }
 0xf2c   :  { %v1795_v6 = vadd.f32 1.1920929e-07, %v1793_v4  ;;  %v4171_v4 = vld [vmem:[%s6033_s2 + $0x38] sm:$0xff] }
 0xf2d   :  { %5097 = vrsqrt.f32 %v1796_v5  ;;  %v4955_v5 = vpack.c.bf16 %v4171_v4, %v4170_v61 }
 0xf2e   :  { %5099 = vrsqrt.f32 %v1795_v6 }
 0xf37   :  { %v5098_v7 = vpop.eup %5097 }
 0xf38   :  { %v5100_v8 = vpop.eup %5099  ;;  %v1800_v10 = vmul.f32 %v5098_v7, %v5560_v45 }
 0xf39   :  { %v1799_v12 = vmul.f32 %v5100_v8, %v5563_v49 }
 0xf3a   :  { %v1808_v14 = vmul.f32 %v4159_v9, %v1800_v10 }
 0xf3b   :  { %v1807_v13 = vmul.f32 %v4159_v9, %v1799_v12 }
 0xf3d   :  { %4601 = vmatprep.mubr.msk.f32.mxu0 %vm154_vm3, %v1807_v13  ;;  %4612 = vmatprep.mubr.msk.f32.mxu1 %vm154_vm3, %v1807_v13 }
 0xf3e   :  { %4602 = vmatmul.mubr.msk.f32.vlgmr.msra.gmra.mrb[18].mxu0 %vm154_vm3, %v1808_v14  ;;  %4613 = vmatmul.mubr.msk.f32.vlgmr.msra.gmra.mrb[22].mxu1 %vm154_vm3, %v1808_v14 }
 0xf3f   :  { %4922 = vmatpush3.bf16.msra.mxu0 %v4919_v17 }
 0xf40   :  { %4924 = vmatprep.subr.bf16.mxu0 %v4923_v21 }
 0xf43   :  { %4926 = vmatpush3.bf16.msra.mxu0 %v4923_v21 }
 0xf44   :  { %4928 = vmatprep.subr.bf16.mxu0 %v4927_v27 }
 0xf47   :  { %4930 = vmatpush3.bf16.msra.mxu0 %v4927_v27 }
 0xf48   :  { %4932 = vmatprep.subr.bf16.mxu0 %v4931_v48 }
 0xf4b   :  { %4934 = vmatpush3.bf16.msra.mxu0 %v4931_v48 }
 0xf4c   :  { %4936 = vmatprep.subr.bf16.mxu0 %v4935_v31 }
 0xf4f   :  { %4938 = vmatpush3.bf16.msra.mxu0 %v4935_v31 }
 0xf50   :  { %4940 = vmatprep.subr.bf16.mxu0 %v4939_v34 }
 0xf53   :  { %4942 = vmatpush3.bf16.msra.mxu0 %v4939_v34 }
 0xf54   :  { %4944 = vmatprep.subr.bf16.mxu0 %v4943_v37 }
 0xf57   :  { %4946 = vmatpush3.bf16.msra.mxu0 %v4943_v37 }
 0xf58   :  { %4948 = vmatprep.subr.bf16.mxu0 %v4947_v40 }
 0xf5b   :  { %4950 = vmatpush3.bf16.msra.mxu0 %v4947_v40 }
 0xf5c   :  { %4691 = vmatprep.subr.mxu0 %v5182_v11 }
0x1011   :  { %v4603_v41 = vpop.f32.mrb[18].mxu0  ;;  %v4614_v42 = vpop.f32.mrb[22].mxu1 }
0x1012   :  { %v4165_v43 = vmul.f32 -1.442695, %v4603_v41  ;;  %v1885_v44 = vpop.f32.mrb[19].mxu0  ;;  %v1964_v24 = vpop.f32.mrb[23].mxu1 }
0x1013   :  { %v4164_v20 = vmul.f32 -1.442695, %v1885_v44 }
0x1014   :  { %5101 = vpow2.f32 %v4165_v43 }
0x1015   :  { %5103 = vpow2.f32 %v4164_v20 }
0x101e   :  { %v5102_v46 = vpop.eup %5101 }
0x101f   :  { %v5104_v50 = vpop.eup %5103  ;;  %v1980_v51 = vadd.f32 1.0, %v5102_v46 }
0x1020   :  { %v1979_v53 = vadd.f32 1.0, %v5104_v50 }
0x1021   :  { %5105 = vrcp.f32 %v1980_v51 }
0x1022   :  { %5107 = vrcp.f32 %v1979_v53 }
0x102b   :  { %v5106_v54 = vpop.eup %5105 }
0x102c   :  { %v5108_v22 = vpop.eup %5107  ;;  %v1986_v23 = vmul.f32 %v5106_v54, %v4603_v41 }
0x102d   :  { %v1985_v55 = vmul.f32 %v5108_v22, %v1885_v44 }
0x102e   :  { %v1988_v56 = vmul.f32 %v4614_v42, %v1986_v23 }
0x102f   :  { %v1987_v57 = vmul.f32 %v1985_v55, %v1964_v24 }
0x1031   :  { %4647 = vmatprep.mubr.f32.mxu0 %v1987_v57 }
0x1032   :  { %4648 = vmatmul.mubr.f32.vlgmr.msra.gmra.mrb[20].mxu0 %v1988_v56 }
0x1033   :  { %4693 = vmatprep.mubr.msk.f32.mxu0 %vm5183_vm4, %v5182_v11 }
0x1105   :  { %v4649_v58 = vpop.f32.mrb[20].mxu0 }
0x1106   :  { %v5656_v60 = vadd.f32 %v4649_v58, %v5560_v45  ;;  %v2071_v62 = vpop.f32.mrb[21].mxu0  ;;  %v4168_v45 = vld [vmem:[%s6033_s2 + $0x20] sm:$0xff] }
0x1107   :  { %v5659_v63 = vadd.f32 %v2071_v62, %v5563_v49  ;;  %v4169_v49 = vld [vmem:[%s6033_s2 + $0x28] sm:$0xff] }
0x1108   :  { %v2085_v0 = vmul.f32 %v5656_v60, %v5656_v60  ;;  %v4951_v3 = vpack.c.bf16 %v4169_v49, %v4168_v45 }
0x1109   :  { %v2084_v1 = vmul.f32 %v5659_v63, %v5659_v63 }
0x110a   :  { %v2089_v2 = vsel %vm154_vm3, %v2085_v0, 0.0  ;;  %4952 = vmatprep.subr.bf16.mxu1 %v4951_v3 }
0x110b   :  { %2090 = vadd.xlane.f32.xlu1 %v2089_v2  ;;  %v2086_v59 = vsel %vm154_vm3, %v2084_v1, 0.0  ;;  %4954 = vmatpush3.bf16.msra.mxu1 %v4951_v3 }
0x110c   :  { %2087 = vadd.xlane.f32.xlu0 %v2086_v59  ;;  %4956 = vmatprep.subr.bf16.mxu1 %v4955_v5 }
0x110f   :  { %4958 = vmatpush3.bf16.msra.mxu1 %v4955_v5 }
0x1110   :  { %4661 = vmatprep.subr.mxu1 %v5182_v11 }
0x1198   :  { %v2091_v6 = vpop.xlane.xlu1 %2090 }
0x1199   :  { %v2093_v7 = vmul.f32 0.03125, %v2091_v6  ;;  %v2088_v8 = vpop.xlane.xlu0 %2087 }
0x119a   :  { %v2092_v9 = vmul.f32 0.03125, %v2088_v8 }
0x119b   :  { %v2095_v10 = vadd.f32 1.1920929e-07, %v2093_v7 }
0x119c   :  { %v2094_v12 = vadd.f32 1.1920929e-07, %v2092_v9 }
0x119d   :  { %5109 = vrsqrt.f32 %v2095_v10 }
0x119e   :  { %5111 = vrsqrt.f32 %v2094_v12 }
0x11a7   :  { %v5110_v13 = vpop.eup %5109 }
0x11a8   :  { %v5112_v14 = vpop.eup %5111  ;;  %v2099_v16 = vmul.f32 %v5110_v13, %v5656_v60 }
0x11a9   :  { %v2098_v17 = vmul.f32 %v5112_v14, %v5659_v63 }
0x11aa   :  { %v2107_v19 = vmul.f32 %v4167_v15, %v2099_v16 }
0x11ab   :  { %v2106_v18 = vmul.f32 %v4167_v15, %v2098_v17 }
0x11ad   :  { %4658 = vmatprep.mubr.msk.f32.mxu1 %vm154_vm3, %v2106_v18 }
0x11ae   :  { %4659 = vmatmul.mubr.msk.f32.vlgmr.msra.gmra.mrb[24].mxu1 %vm154_vm3, %v2107_v19 }
0x11af   :  { %4663 = vmatprep.mubr.msk.f32.mxu1 %vm5183_vm4, %v5182_v11 }
0x1281   :  { %v5689_v21 = vpop.f32.mrb[24].mxu1 }
0x1282   :  { %2272 = vrot.lane.b32.xlu1 %v5689_v21, %s5184_s13  ;;  %v5693_v25 = vpop.f32.mrb[25].mxu1 }
0x1283   :  { %2195 = vrot.lane.b32.xlu0 %v5693_v25, %s5184_s13 }
0x12f4   :  { %v2273_v27 = vpop.permute.xlu1 %2272 }
0x12f5   :  { %v2196_v26 = vpop.permute.xlu0 %2195 }
0x12f6   :  { %4662 = vmatpush3.xpose.msk.msra.mxu1 %vm266_vm5, %v2196_v26 }
0x12f7   :  { %4666 = vmatprep.subr.mxu1 %v5182_v11 }
0x12f9   :  { %4664 = vmatmul.mubr.msk.f32.vlgmr.msra.gmra.mrb[26].mxu1 %vm266_vm5, %v5693_v25 }
0x12fa   :  { %4667 = vmatpush3.xpose.msk.msra.mxu1 %vm266_vm5, %v2273_v27  ;;  %4668 = vmatprep.mubr.msk.f32.mxu1 %vm5183_vm4, %v5182_v11 }
0x12fb   :  { %4671 = vmatprep.subr.mxu1 %v5182_v11 }
0x12fd   :  { %4669 = vmatmul.mubr.msk.f32.vlgmr.msra.gmra.mrb[28].mxu1 %vm266_vm5, %v5689_v21 }
0x12fe   :  { %4673 = vmatprep.mubr.msk.f32.mxu1 %vm5183_vm4, %v5182_v11 }
0x13cc   :  { %v2267_v28 = vpop.f32.mrb[26].mxu1 }
0x13cd   :  { %v2348_v29 = vmul.f32 0.25, %v2267_v28  ;;  %v4665_v48 = vpop.f32.mrb[27].mxu1 }
0x13cf   :  { %v2350_v47 = vsel %vm5358_vm6, %v2348_v29, -inf }
0x13d0   :  { %v2344_v30 = vpop.f32.mrb[28].mxu1  ;;  %v2352_v31 = vsel %vm424_vm7, %v2350_v47, -inf }
0x13d1   :  { %v2349_v32 = vmul.f32 0.25, %v2344_v30  ;;  %2353 = vmax.xlane.f32.xlu1 %v2352_v31  ;;  %v4670_v33 = vpop.f32.mrb[29].mxu1 }
0x13d3   :  { %v2351_v34 = vsel %vm5358_vm6, %v2349_v32, -inf }
0x13d4   :  { %v2355_v35 = vsel %vm424_vm7, %v2351_v34, -inf }
0x13d5   :  { %2356 = vmax.xlane.f32.xlu0 %v2355_v35 }
0x13e2   :  { %2450 = vrot.lane.b32.xlu1 %v5689_v21, %s5185_s14 }
0x145e   :  { %v2354_v36 = vpop.xlane.xlu1 %2353 }
0x145f   :  { %v2358_v37 = vsub.f32 %v2350_v47, %v2354_v36 }
0x1461   :  { %v2360_v38 = vmul.f32 1.442695, %v2358_v37 }
0x1462   :  { %v2357_v39 = vpop.xlane.xlu0 %2356  ;;  %v2451_v20 = vpop.permute.xlu1 %2450 }
0x1463   :  { %5113 = vpow2.f32 %v2360_v38  ;;  %v2359_v40 = vsub.f32 %v2351_v34, %v2357_v39 }
0x1465   :  { %v2362_v41 = vmul.f32 1.442695, %v2359_v40 }
0x1467   :  { %5115 = vpow2.f32 %v2362_v41 }
0x146d   :  { %v5114_v42 = vpop.eup %5113 }
0x146e   :  { %v2364_v43 = vsel %vm424_vm7, %v5114_v42, 0.0 }
0x146f   :  { %2365 = vadd.xlane.f32.xlu0 %v2364_v43 }
0x1471   :  { %v5116_v44 = vpop.eup %5115 }
0x1472   :  { %v2367_v24 = vsel %vm424_vm7, %v5116_v44, 0.0 }
0x1473   :  { %2368 = vadd.xlane.f32.xlu1 %v2367_v24 }
0x1484   :  { %2526 = vrot.lane.b32.xlu1 %v5693_v25, %s5186_s15 }
0x1485   :  { %2374 = vrot.lane.b32.xlu0 %v5693_v25, %s5185_s14 }
0x1489   :  { %2600 = vrot.lane.b32.xlu0 %v5689_v21, %s5186_s15 }
0x14fc   :  { %v2366_v46 = vpop.xlane.xlu0 %2365 }
0x14fd   :  { %5117 = vrcp.f32 %v2366_v46 }
0x1500   :  { %v2369_v50 = vpop.xlane.xlu1 %2368  ;;  %v2375_v51 = vpop.permute.xlu0 %2374 }
0x1501   :  { %5119 = vrcp.f32 %v2369_v50  ;;  %4672 = vmatpush3.msra.mxu1 %v2375_v51  ;;  %4692 = vmatpush3.msra.mxu0 %v2375_v51 }
0x1502   :  { %4676 = vmatprep.subr.mxu1 %v5182_v11  ;;  %4701 = vmatprep.subr.mxu0 %v5182_v11 }
0x1504   :  { %v2527_v55 = vpop.permute.xlu1 %2526  ;;  %v2601_v56 = vpop.permute.xlu0 %2600 }
0x1507   :  { %v5118_v53 = vpop.eup %5117 }
0x1508   :  { %v2372_v54 = vmul.f32 %v5118_v53, %v5114_v42 }
0x150a   :  { %4674 = vmatmul.mubr.msk.f32.vlgmr.msra.gmra.mrb[30].mxu1 %vm424_vm7, %v2372_v54 }
0x150b   :  { %v5120_v22 = vpop.eup %5119  ;;  %4677 = vmatpush3.msra.mxu1 %v2451_v20  ;;  %4678 = vmatprep.mubr.msk.f32.mxu1 %vm5183_vm4, %v5182_v11 }
0x150c   :  { %v2373_v23 = vmul.f32 %v5120_v22, %v5116_v44  ;;  %4681 = vmatprep.subr.mxu1 %v5182_v11 }
0x150e   :  { %4679 = vmatmul.mubr.msk.f32.vlgmr.msra.gmra.mrb[32].mxu1 %vm424_vm7, %v2373_v23 }
0x150f   :  { %4683 = vmatprep.mubr.msk.f32.mxu1 %vm5183_vm4, %v5182_v11 }
0x1512   :  { %4682 = vmatpush3.xpose.msk.msra.mxu1 %vm266_vm5, %v2196_v26 }
0x1513   :  { %4686 = vmatprep.subr.mxu1 %v5182_v11 }
0x1515   :  { %4684 = vmatmul.mubr.msk.f32.vlgmr.msra.gmra.mrb[34].mxu1 %vm266_vm5, %v2527_v55 }
0x1516   :  { %4687 = vmatpush3.xpose.msk.msra.mxu1 %vm266_vm5, %v2273_v27  ;;  %4688 = vmatprep.mubr.msk.f32.mxu1 %vm5183_vm4, %v5182_v11 }
0x1517   :  { %4696 = vmatprep.subr.mxu1 %v5182_v11 }
0x1519   :  { %4689 = vmatmul.mubr.msk.f32.vlgmr.msra.gmra.mrb[36].mxu1 %vm266_vm5, %v2601_v56 }
0x151a   :  { %4697 = vmatpush3.msra.mxu1 %v2451_v20  ;;  %4698 = vmatprep.mubr.msk.f32.mxu1 %vm5183_vm4, %v5182_v11 }
0x151b   :  { %4706 = vmatprep.subr.mxu1 %v5182_v11 }
0x15dd   :  { %v5745_v57 = vpop.f32.mrb[30].mxu1 }
0x15de   :  { %v4675_v58 = vpop.f32.mrb[31].mxu1 }
0x15e1   :  { %v5747_v62 = vpop.f32.mrb[32].mxu1 }
0x15e2   :  { %v4680_v0 = vpop.f32.mrb[33].mxu1 }
0x15e8   :  { %v2596_v1 = vpop.f32.mrb[34].mxu1 }
0x15e9   :  { %v2674_v2 = vmul.f32 0.25, %v2596_v1  ;;  %v4685_v59 = vpop.f32.mrb[35].mxu1 }
0x15eb   :  { %v2676_v45 = vsel %vm5358_vm6, %v2674_v2, -inf }
0x15ec   :  { %v2670_v49 = vpop.f32.mrb[36].mxu1  ;;  %v2678_v61 = vsel %vm424_vm7, %v2676_v45, -inf }
0x15ed   :  { %v2675_v3 = vmul.f32 0.25, %v2670_v49  ;;  %2679 = vmax.xlane.f32.xlu1 %v2678_v61  ;;  %v4690_v4 = vpop.f32.mrb[37].mxu1 }
0x15ef   :  { %v2677_v5 = vsel %vm5358_vm6, %v2675_v3, -inf }
0x15f0   :  { %v2681_v6 = vsel %vm424_vm7, %v2677_v5, -inf }
0x15f1   :  { %2682 = vmax.xlane.f32.xlu0 %v2681_v6 }
0x15fe   :  { %2926 = vrot.lane.b32.xlu1 %v5689_v21, %s5187_s16 }
0x167a   :  { %v2680_v7 = vpop.xlane.xlu1 %2679 }
0x167b   :  { %v2684_v8 = vsub.f32 %v2676_v45, %v2680_v7 }
0x167d   :  { %v2686_v9 = vmul.f32 1.442695, %v2684_v8 }
0x167e   :  { %v2683_v10 = vpop.xlane.xlu0 %2682  ;;  %v5765_v18 = vpop.permute.xlu1 %2926 }
0x167f   :  { %5121 = vpow2.f32 %v2686_v9  ;;  %v2685_v12 = vsub.f32 %v2677_v5, %v2683_v10 }
0x1681   :  { %v2688_v13 = vmul.f32 1.442695, %v2685_v12 }
0x1683   :  { %5123 = vpow2.f32 %v2688_v13 }
0x1689   :  { %v5122_v14 = vpop.eup %5121 }
0x168a   :  { %v2690_v15 = vsel %vm424_vm7, %v5122_v14, 0.0 }
0x168b   :  { %2691 = vadd.xlane.f32.xlu0 %v2690_v15 }
0x168d   :  { %v5124_v16 = vpop.eup %5123 }
0x168e   :  { %v2693_v17 = vsel %vm424_vm7, %v5124_v16, 0.0 }
0x168f   :  { %2694 = vadd.xlane.f32.xlu1 %v2693_v17 }
0x16a0   :  { %2846 = vrot.lane.b32.xlu1 %v5693_v25, %s5188_s17 }
0x16a1   :  { %2848 = vrot.lane.b32.xlu0 %v5693_v25, %s5187_s16 }
0x16a5   :  { %2924 = vrot.lane.b32.xlu0 %v5689_v21, %s5188_s17 }
0x1718   :  { %v2692_v19 = vpop.xlane.xlu0 %2691 }
0x1719   :  { %5125 = vrcp.f32 %v2692_v19 }
0x171c   :  { %v2695_v26 = vpop.xlane.xlu1 %2694  ;;  %v5767_v29 = vpop.permute.xlu0 %2848 }
0x171d   :  { %5127 = vrcp.f32 %v2695_v26 }
0x1720   :  { %v2847_v30 = vpop.permute.xlu1 %2846  ;;  %v2925_v31 = vpop.permute.xlu0 %2924 }
0x1723   :  { %v5126_v27 = vpop.eup %5125 }
0x1724   :  { %v2698_v28 = vmul.f32 %v5126_v27, %v5122_v14 }
0x1726   :  { %4694 = vmatmul.mubr.msk.f32.vlgmr.msra.gmra.mrb[22].mxu0 %vm424_vm7, %v2698_v28 }
0x1727   :  { %v5128_v48 = vpop.eup %5127  ;;  %4702 = vmatpush3.xpose.msk.msra.mxu0 %vm266_vm5, %v5767_v29  ;;  %4703 = vmatprep.mubr.msk.f32.mxu0 %vm5183_vm4, %v5182_v11 }
0x1728   :  { %v2699_v47 = vmul.f32 %v5128_v48, %v5124_v16  ;;  %4711 = vmatprep.subr.mxu0 %v5182_v11 }
0x172a   :  { %4699 = vmatmul.mubr.msk.f32.vlgmr.msra.gmra.mrb[38].mxu1 %vm424_vm7, %v2699_v47  ;;  %4704 = vmatmul.mubr.msk.f32.vlgmr.msra.gmra.mrb[24].mxu0 %vm266_vm5, %v2847_v30 }
0x172b   :  { %4707 = vmatpush3.xpose.msk.msra.mxu1 %vm266_vm5, %v5765_v18  ;;  %4708 = vmatprep.mubr.msk.f32.mxu1 %vm5183_vm4, %v5182_v11 }
0x172c   :  { %4716 = vmatprep.subr.mxu1 %v5182_v11  ;;  %4713 = vmatprep.mubr.msk.f32.mxu0 %vm5183_vm4, %v5182_v11 }
0x172e   :  { %4709 = vmatmul.mubr.msk.f32.vlgmr.msra.gmra.mrb[40].mxu1 %vm266_vm5, %v2925_v31 }
0x172f   :  { %4718 = vmatprep.mubr.msk.f32.mxu1 %vm5183_vm4, %v5182_v11 }
0x17f9   :  { %v5787_v32 = vpop.f32.mrb[22].mxu0 }
0x17fa   :  { %v4695_v33 = vpop.f32.mrb[23].mxu0 }
0x17fd   :  { %v5789_v34 = vpop.f32.mrb[38].mxu1  ;;  %v2920_v35 = vpop.f32.mrb[24].mxu0 }
0x17fe   :  { %v3002_v36 = vmul.f32 0.25, %v2920_v35  ;;  %v4700_v37 = vpop.f32.mrb[39].mxu1  ;;  %v4705_v38 = vpop.f32.mrb[25].mxu0 }
0x17ff   :  { %v4200_v38 = vld [vmem:[%s6034_s3 + $0x50] sm:$0xff] }
0x1800   :  { %v3004_v39 = vsel %vm5358_vm6, %v3002_v36, -inf }
0x1801   :  { %v2998_v40 = vpop.f32.mrb[40].mxu1  ;;  %v3006_v41 = vsel %vm424_vm7, %v3004_v39, -inf }
0x1802   :  { %v3003_v42 = vmul.f32 0.25, %v2998_v40  ;;  %3007 = vmax.xlane.f32.xlu1 %v3006_v41  ;;  %v4710_v43 = vpop.f32.mrb[41].mxu1  ;;  %v4201_v40 = vld [vmem:[%s6034_s3 + $0x58] sm:$0xff] }
0x1803   :  { %v4963_v41 = vpack.c.bf16 %v4201_v40, %v4200_v38  ;;  %v4203_v43 = vld [vmem:[%s6034_s3 + $0x68] sm:$0xff] }
0x1804   :  { %v3005_v44 = vsel %vm5358_vm6, %v3003_v42, -inf  ;;  %v4202_v42 = vld [vmem:[%s6034_s3 + $0x60] sm:$0xff] }
0x1805   :  { %v3009_v24 = vsel %vm424_vm7, %v3005_v44, -inf }
0x1806   :  { %3010 = vmax.xlane.f32.xlu0 %v3009_v24  ;;  %v4204_v24 = vld [vmem:[%s6034_s3 + $0x70] sm:$0xff] }
0x1813   :  { %3104 = vrot.lane.b32.xlu1 %v5689_v21, %s5189_s18 }
0x188f   :  { %v3008_v20 = vpop.xlane.xlu1 %3007 }
0x1890   :  { %v3012_v46 = vsub.f32 %v3004_v39, %v3008_v20  ;;  %v4205_v20 = vld [vmem:[%s6034_s3 + $0x78] sm:$0xff] }
0x1892   :  { %v3014_v50 = vmul.f32 1.442695, %v3012_v46  ;;  %v4971_v46 = vpack.c.bf16 %v4205_v20, %v4204_v24 }
0x1893   :  { %v3105_v51 = vpop.permute.xlu1 %3104  ;;  %v3011_v53 = vpop.xlane.xlu0 %3010 }
0x1894   :  { %5129 = vpow2.f32 %v3014_v50  ;;  %v3013_v54 = vsub.f32 %v3005_v44, %v3011_v53  ;;  %4717 = vmatpush3.msra.mxu1 %v3105_v51  ;;  %v4967_v44 = vpack.c.bf16 %v4203_v43, %v4202_v42  ;;  %v4208_v50 = vld [vmem:[%s6035_s4 + $0x40] sm:$0xff]  ;;  %v4210_v53 = vld [vmem:[%s6035_s4 + $0x50] sm:$0xff] }
0x1895   :  { %4726 = vmatprep.subr.mxu1 %v5182_v11  ;;  %v4219_v42 = vld [vmem:[%s6040_s9 + $0x1] ss:$0 sm:$0xff] }
0x1896   :  { %v3016_v22 = vmul.f32 1.442695, %v3013_v54 }
0x1898   :  { %5131 = vpow2.f32 %v3016_v22  ;;  %v4211_v22 = vld [vmem:[%s6035_s4 + $0x58] sm:$0xff] }
0x189e   :  { %v5130_v23 = vpop.eup %5129 }
0x189f   :  { %v3018_v55 = vsel %vm424_vm7, %v5130_v23, 0.0 }
0x18a0   :  { %3019 = vadd.xlane.f32.xlu0 %v3018_v55  ;;  %v4212_v55 = vld [vmem:[%s6035_s4 + $0x60] sm:$0xff] }
0x18a2   :  { %v5132_v56 = vpop.eup %5131 }
0x18a3   :  { %v3021_v58 = vsel %vm424_vm7, %v5132_v56, 0.0 }
0x18a4   :  { %3022 = vadd.xlane.f32.xlu1 %v3021_v58 }
0x18b5   :  { %3180 = vrot.lane.b32.xlu1 %v5693_v25, %s5190_s0 }
0x18b6   :  { %3028 = vrot.lane.b32.xlu0 %v5693_v25, %s5189_s18 }
0x18ba   :  { %3254 = vrot.lane.b32.xlu0 %v5689_v21, %s5190_s0 }
0x192d   :  { %v3020_v0 = vpop.xlane.xlu0 %3019 }
0x192e   :  { %5133 = vrcp.f32 %v3020_v0  ;;  %v4214_v0 = vld [vmem:[%s6035_s4 + $0x70] sm:$0xff] }
0x1931   :  { %v3023_v1 = vpop.xlane.xlu1 %3022  ;;  %v3029_v2 = vpop.permute.xlu0 %3028 }
0x1932   :  { %5135 = vrcp.f32 %v3023_v1  ;;  %4712 = vmatpush3.msra.mxu0 %v3029_v2  ;;  %v4215_v1 = vld [vmem:[%s6035_s4 + $0x78] sm:$0xff] }
0x1933   :  { %4721 = vmatprep.subr.mxu0 %v5182_v11 }
0x1935   :  { %v3181_v25 = vpop.permute.xlu1 %3180  ;;  %v3255_v61 = vpop.permute.xlu0 %3254 }
0x1938   :  { %v5134_v59 = vpop.eup %5133 }
0x1939   :  { %v3026_v45 = vmul.f32 %v5134_v59, %v5130_v23  ;;  %v4979_v23 = vpack.c.bf16 %v4211_v22, %v4210_v53  ;;  %v4236_v53 = vld [vmem:[%s6038_s7 + $0x90] sm:$0xff] }
0x193b   :  { %4714 = vmatmul.mubr.msk.f32.vlgmr.msra.gmra.mrb[26].mxu0 %vm424_vm7, %v3026_v45  ;;  %v4987_v45 = vpack.c.bf16 %v4215_v1, %v4214_v0  ;;  %v4241_v0 = vld [vmem:[%s6038_s7 + $0xb8] sm:$0xff] }
0x193c   :  { %v5136_v49 = vpop.eup %5135  ;;  %4722 = vmatpush3.xpose.msk.msra.mxu0 %vm266_vm5, %v5767_v29  ;;  %4723 = vmatprep.mubr.msk.f32.mxu0 %vm5183_vm4, %v5182_v11 }
0x193d   :  { %v3027_v21 = vmul.f32 %v5136_v49, %v5132_v56  ;;  %4731 = vmatprep.subr.mxu0 %v5182_v11  ;;  %v4213_v56 = vld [vmem:[%s6035_s4 + $0x68] sm:$0xff] }
0x193e   :  { %v4983_v58 = vpack.c.bf16 %v4213_v56, %v4212_v55  ;;  %v4239_v55 = vld [vmem:[%s6038_s7 + $0xa8] sm:$0xff] }
0x193f   :  { %4719 = vmatmul.mubr.msk.f32.vlgmr.msra.gmra.mrb[42].mxu1 %vm424_vm7, %v3027_v21  ;;  %4724 = vmatmul.mubr.msk.f32.vlgmr.msra.gmra.mrb[28].mxu0 %vm266_vm5, %v3181_v25 }
0x1940   :  { %4727 = vmatpush3.xpose.msk.msra.mxu1 %vm266_vm5, %v5765_v18  ;;  %4732 = vmatpush3.msra.mxu0 %v3029_v2 }
0x1941   :  { %4728 = vmatprep.mubr.msk.f32.mxu1 %vm5183_vm4, %v5182_v11  ;;  %4736 = vmatprep.subr.mxu1 %v5182_v11 }
0x1942   :  { %4733 = vmatprep.mubr.msk.f32.mxu0 %vm5183_vm4, %v5182_v11 }
0x1943   :  { %4729 = vmatmul.mubr.msk.f32.vlgmr.msra.gmra.mrb[44].mxu1 %vm266_vm5, %v3255_v61 }
0x1944   :  { %4737 = vmatpush3.msra.mxu1 %v3105_v51  ;;  %4738 = vmatprep.mubr.msk.f32.mxu1 %vm5183_vm4, %v5182_v11  ;;  %v4209_v51 = vld [vmem:[%s6035_s4 + $0x48] sm:$0xff] }
0x1945   :  { %v4975_v54 = vpack.c.bf16 %v4209_v51, %v4208_v50  ;;  %v4235_v50 = vld [vmem:[%s6038_s7 + $0x88] sm:$0xff] }
0x1947   :  { %4976 = vmatprep.subr.bf16.mxu1 %v4975_v54 }
0x1a0e   :  { %v3100_v3 = vpop.f32.mrb[26].mxu0 }
0x1a0f   :  { %v4715_v4 = vpop.f32.mrb[27].mxu0 }
0x1a12   :  { %v3176_v5 = vpop.f32.mrb[42].mxu1  ;;  %v3250_v6 = vpop.f32.mrb[28].mxu0 }
0x1a13   :  { %v3328_v7 = vmul.f32 0.25, %v3250_v6  ;;  %v4720_v8 = vpop.f32.mrb[43].mxu1  ;;  %v4725_v9 = vpop.f32.mrb[29].mxu0 }
0x1a15   :  { %v3330_v10 = vsel %vm5358_vm6, %v3328_v7, -inf }
0x1a16   :  { %v3324_v12 = vpop.f32.mrb[44].mxu1  ;;  %v3332_v13 = vsel %vm424_vm7, %v3330_v10, -inf }
0x1a17   :  { %v3329_v14 = vmul.f32 0.25, %v3324_v12  ;;  %3333 = vmax.xlane.f32.xlu1 %v3332_v13  ;;  %v4730_v15 = vpop.f32.mrb[45].mxu1 }
0x1a19   :  { %v3331_v16 = vsel %vm5358_vm6, %v3329_v14, -inf }
0x1a1a   :  { %v3335_v11 = vsel %vm424_vm7, %v3331_v16, -inf }
0x1a1b   :  { %3336 = vmax.xlane.f32.xlu0 %v3335_v11 }
0x1aa4   :  { %v3334_v17 = vpop.xlane.xlu1 %3333 }
0x1aa5   :  { %v3338_v18 = vsub.f32 %v3330_v10, %v3334_v17 }
0x1aa7   :  { %v3340_v19 = vmul.f32 1.442695, %v3338_v18 }
0x1aa8   :  { %v3337_v26 = vpop.xlane.xlu0 %3336 }
0x1aa9   :  { %5137 = vpow2.f32 %v3340_v19  ;;  %v3339_v27 = vsub.f32 %v3331_v16, %v3337_v26 }
0x1aab   :  { %v3342_v28 = vmul.f32 1.442695, %v3339_v27  ;;  %v4226_v27 = vld [vmem:[%s6037_s6 + $0x20] sm:$0xff] }
0x1aad   :  { %5139 = vpow2.f32 %v3342_v28 }
0x1ab3   :  { %v5138_v29 = vpop.eup %5137 }
0x1ab4   :  { %v3344_v48 = vsel %vm424_vm7, %v5138_v29, 0.0 }
0x1ab5   :  { %3345 = vadd.xlane.f32.xlu0 %v3344_v48  ;;  %v4222_v48 = vld [vmem:[%s6036_s5 + $0x30] sm:$0xff] }
0x1ab7   :  { %v5140_v47 = vpop.eup %5139 }
0x1ab8   :  { %v3347_v30 = vsel %vm424_vm7, %v5140_v47, 0.0 }
0x1ab9   :  { %3348 = vadd.xlane.f32.xlu1 %v3347_v30 }
0x1aca   :  { %3504 = vrot.lane.b32.xlu1 %v5789_v34, %s5189_s18  ;;  %v4199_v34 = vld [vmem:[%s6034_s3 + $0x48] sm:$0xff] }
0x1acb   :  { %3502 = vrot.lane.b32.xlu0 %v5787_v32, %s5189_s18  ;;  %v4198_v32 = vld [vmem:[%s6034_s3 + $0x40] sm:$0xff] }
0x1acc   :  { %v4959_v39 = vpack.c.bf16 %v4199_v34, %v4198_v32 }
0x1ace   :  { %3510 = vrot.lane.b32.xlu1 %v3100_v3, %s5187_s16  ;;  %4960 = vmatprep.subr.bf16.mxu0 %v4959_v39 }
0x1acf   :  { %3512 = vrot.lane.b32.xlu0 %v3176_v5, %s5187_s16 }
0x1b42   :  { %v3346_v52 = vpop.xlane.xlu0 %3345 }
0x1b43   :  { %5141 = vrcp.f32 %v3346_v52 }
0x1b46   :  { %v3349_v31 = vpop.xlane.xlu1 %3348  ;;  %v3503_v61 = vpop.permute.xlu0 %3502 }
0x1b47   :  { %5143 = vrcp.f32 %v3349_v31  ;;  %v3524_v4 = vsel %vm266_vm5, %v5745_v57, %v3503_v61  ;;  %v4228_v31 = vld [vmem:[%s6037_s6 + $0x30] sm:$0xff]  ;;  %v4246_v61 = vld [vmem:[%s6038_s7 + $0xe0] sm:$0xff] }
0x1b4a   :  { %v3505_v25 = vpop.permute.xlu1 %3504  ;;  %v3513_v5 = vpop.permute.xlu0 %3512 }
0x1b4b   :  { %v3525_v8 = vsel %vm266_vm5, %v5747_v62, %v3505_v25 }
0x1b4c   :  { %v3527_v10 = vsel %vm154_vm3, %v3525_v8, %v3513_v5  ;;  %v4248_v5 = vld [vmem:[%s6038_s7 + $0xf0] sm:$0xff]  ;;  %v4014_v8 = vld [vmem:[%s6041_s10] sm:$0xff] }
0x1b4d   :  { %v5142_v33 = vpop.eup %5141 }
0x1b4e   :  { %v3352_v35 = vmul.f32 %v5142_v33, %v5138_v29  ;;  %v3511_v3 = vpop.permute.xlu1 %3510  ;;  %v4227_v29 = vld [vmem:[%s6037_s6 + $0x28] sm:$0xff]  ;;  %v4229_v33 = vld [vmem:[%s6037_s6 + $0x38] sm:$0xff] }
0x1b4f   :  { %v3526_v6 = vsel %vm154_vm3, %v3524_v4, %v3511_v3  ;;  %v4999_v30 = vpack.c.bf16 %v4227_v29, %v4226_v27  ;;  %v4247_v3 = vld [vmem:[%s6038_s7 + $0xe8] sm:$0xff] }
0x1b50   :  { %4734 = vmatmul.mubr.msk.f32.vlgmr.msra.gmra.mrb[30].mxu0 %vm424_vm7, %v3352_v35  ;;  %v5003_v35 = vpack.c.bf16 %v4229_v33, %v4228_v31  ;;  %v5031_v4 = vpack.c.bf16 %v4247_v3, %v4246_v61 }
0x1b51   :  { %v5144_v36 = vpop.eup %5143  ;;  %4962 = vmatpush3.bf16.msra.mxu0 %v4959_v39 }
0x1b52   :  { %v3353_v37 = vmul.f32 %v5144_v36, %v5140_v47  ;;  %4964 = vmatprep.subr.bf16.mxu0 %v4963_v41  ;;  %v4223_v47 = vld [vmem:[%s6036_s5 + $0x38] sm:$0xff] }
0x1b53   :  { %v4995_v52 = vpack.c.bf16 %v4223_v47, %v4222_v48  ;;  %v4016_v47 = vld [vmem:[%s6041_s10 + $0x10] sm:$0xff] }
0x1b54   :  { %4739 = vmatmul.mubr.msk.f32.vlgmr.msra.gmra.mrb[46].mxu1 %vm424_vm7, %v3353_v37 }
0x1b55   :  { %4966 = vmatpush3.bf16.msra.mxu0 %v4963_v41  ;;  %4978 = vmatpush3.bf16.msra.mxu1 %v4975_v54  ;;  %v4237_v54 = vld [vmem:[%s6038_s7 + $0x98] sm:$0xff] }
0x1b56   :  { %4968 = vmatprep.subr.bf16.mxu0 %v4967_v44  ;;  %4980 = vmatprep.subr.bf16.mxu1 %v4979_v23  ;;  %v5011_v22 = vpack.c.bf16 %v4237_v54, %v4236_v53 }
0x1b59   :  { %4970 = vmatpush3.bf16.msra.mxu0 %v4967_v44  ;;  %4982 = vmatpush3.bf16.msra.mxu1 %v4979_v23  ;;  %v4238_v23 = vld [vmem:[%s6038_s7 + $0xa0] sm:$0xff] }
0x1b5a   :  { %4972 = vmatprep.subr.bf16.mxu0 %v4971_v46  ;;  %4984 = vmatprep.subr.bf16.mxu1 %v4983_v58  ;;  %v5015_v56 = vpack.c.bf16 %v4239_v55, %v4238_v23 }
0x1b5d   :  { %4974 = vmatpush3.bf16.msra.mxu0 %v4971_v46  ;;  %4986 = vmatpush3.bf16.msra.mxu1 %v4983_v58  ;;  %v4234_v46 = vld [vmem:[%s6038_s7 + $0x80] sm:$0xff]  ;;  %v4240_v58 = vld [vmem:[%s6038_s7 + $0xb0] sm:$0xff] }
0x1b5e   :  { %4988 = vmatprep.subr.bf16.mxu1 %v4987_v45  ;;  %v5007_v51 = vpack.c.bf16 %v4235_v50, %v4234_v46  ;;  %v5019_v1 = vpack.c.bf16 %v4241_v0, %v4240_v58 }
0x1b61   :  { %4990 = vmatpush3.bf16.msra.mxu1 %v4987_v45 }
0x1b62   :  { %5000 = vmatprep.subr.bf16.mxu1 %v4999_v30 }
0x1c23   :  { %v3423_v2 = vpop.f32.mrb[30].mxu0 }
0x1c24   :  { %3518 = vrot.lane.b32.xlu1 %v3423_v2, %s5190_s0  ;;  %v4735_v59 = vpop.f32.mrb[31].mxu0  ;;  %v4242_v2 = vld [vmem:[%s6038_s7 + $0xc0] sm:$0xff] }
0x1c25   :  { %v4243_v59 = vld [vmem:[%s6038_s7 + $0xc8] sm:$0xff] }
0x1c26   :  { %v5023_v45 = vpack.c.bf16 %v4243_v59, %v4242_v2 }
0x1c27   :  { %v3496_v49 = vpop.f32.mrb[46].mxu1 }
0x1c28   :  { %3520 = vrot.lane.b32.xlu0 %v3496_v49, %s5190_s0  ;;  %v4740_v21 = vpop.f32.mrb[47].mxu1  ;;  %v4244_v49 = vld [vmem:[%s6038_s7 + $0xd0] sm:$0xff] }
0x1c29   :  { %v4245_v21 = vld [vmem:[%s6038_s7 + $0xd8] sm:$0xff] }
0x1c2a   :  { %v5027_v25 = vpack.c.bf16 %v4245_v21, %v4244_v49 }
0x1c96   :  { %v3519_v7 = vpop.permute.xlu1 %3518 }
0x1c97   :  { %v3528_v9 = vsel %vm1601_vm8, %v3526_v6, %v3519_v7  ;;  %v4249_v6 = vld [vmem:[%s6038_s7 + $0xf8] sm:$0xff] }
0x1c98   :  { %4757 = vmatprep.mubr.msk.f32.mxu0 %vm66_vm0, %v3528_v9  ;;  %v5035_v7 = vpack.c.bf16 %v4249_v6, %v4248_v5  ;;  %v4015_v9 = vld [vmem:[%s6041_s10 + $0x8] sm:$0xff] }
0x1c9a   :  { %v3521_v12 = vpop.permute.xlu0 %3520 }
0x1c9b   :  { %v3529_v13 = vsel %vm1601_vm8, %v3527_v10, %v3521_v12  ;;  %v5039_v10 = vpack.c.bf16 %v4015_v9, %v4014_v8 }
0x1c9c   :  { %4758 = vmatmul.mubr.msk.f32.vlgmr.msra.gmra.mrb[32].mxu0 %vm66_vm0, %v3529_v13 }
0x1d6f   :  { %v4759_v14 = vpop.f32.mrb[32].mxu0 }
0x1d70   :  { %v3611_v57 = vpop.f32.mrb[33].mxu0 }
0x1d71   :  { %4776 = vmatprep.mubr.msk.f32.mxu1 %vm66_vm0, %v3611_v57 }
0x1d72   :  { %4777 = vmatmul.mubr.msk.f32.vlgmr.msra.gmra.mrb[48].mxu1 %vm66_vm0, %v4759_v14 }
0x1d73   :  { %5002 = vmatpush3.bf16.msra.mxu1 %v4999_v30  ;;  %v4017_v30 = vld [vmem:[%s6041_s10 + $0x18] sm:$0xff]  ;;  %s5157_s10 = scalar_lea.vmem %s4114_s25, 256 }
0x1d74   :  { %5004 = vmatprep.subr.bf16.mxu1 %v5003_v35  ;;  %p5158_p0 = scmp.ne.s32.totalorder %s4114_s25, %s5157_s10  ;;  %p5163_p2 = scmp.lt.s32.totalorder %s5157_s10, %s5157_s10 }
0x1d76   :  { %p5164_p3 = por %p5163_p2, %p5162_p1 }
0x1d77   :  { %5006 = vmatpush3.bf16.msra.mxu1 %v5003_v35 }
0x1d78   :  { %5040 = vmatprep.subr.bf16.mxu1 %v5039_v10  ;;  %p5165_p4 = pnand %p5164_p3, %p5158_p0 }
0x1e45   :  { %v4778_v15 = vpop.f32.mrb[48].mxu1 }
0x1e46   :  { %v5906_v62 = vadd.f32 %v4778_v15, %v5656_v60  ;;  %v3701_v16 = vpop.f32.mrb[49].mxu1  ;;  %v4220_v60 = vld [vmem:[%s6036_s5 + $0x20] sm:$0xff] }
0x1e47   :  { %v5909_v11 = vadd.f32 %v3701_v16, %v5659_v63  ;;  %v4221_v63 = vld [vmem:[%s6036_s5 + $0x28] sm:$0xff] }
0x1e48   :  { %v3715_v17 = vmul.f32 %v5906_v62, %v5906_v62  ;;  %v4991_v28 = vpack.c.bf16 %v4221_v63, %v4220_v60 }
0x1e49   :  { %v3714_v18 = vmul.f32 %v5909_v11, %v5909_v11 }
0x1e4a   :  { %v3719_v19 = vsel %vm154_vm3, %v3715_v17, 0.0  ;;  %4992 = vmatprep.subr.bf16.mxu0 %v4991_v28 }
0x1e4b   :  { %3720 = vadd.xlane.f32.xlu0 %v3719_v19  ;;  %v3716_v26 = vsel %vm154_vm3, %v3714_v18, 0.0  ;;  %4994 = vmatpush3.bf16.msra.mxu0 %v4991_v28 }
0x1e4c   :  { %3717 = vadd.xlane.f32.xlu1 %v3716_v26  ;;  %4996 = vmatprep.subr.bf16.mxu0 %v4995_v52 }
0x1e4f   :  { %4998 = vmatpush3.bf16.msra.mxu0 %v4995_v52  ;;  %v5043_v52 = vpack.c.bf16 %v4017_v30, %v4016_v47 }
0x1e50   :  { %5008 = vmatprep.subr.bf16.mxu0 %v5007_v51 }
0x1ed8   :  { %v3721_v36 = vpop.xlane.xlu0 %3720 }
0x1ed9   :  { %v3723_v37 = vmul.f32 0.03125, %v3721_v36  ;;  %v3718_v32 = vpop.xlane.xlu1 %3717 }
0x1eda   :  { %v3722_v34 = vmul.f32 0.03125, %v3718_v32 }
0x1edb   :  { %v3725_v38 = vadd.f32 1.1920929e-07, %v3723_v37  ;;  %v4250_v37 = vld [vmem:[%s6042_s11] ss:$0 sm:$0xff] }
0x1edc   :  { %v3724_v39 = vadd.f32 1.1920929e-07, %v3722_v34 }
0x1edd   :  { %5145 = vrsqrt.f32 %v3725_v38 }
0x1ede   :  { %5147 = vrsqrt.f32 %v3724_v39 }
0x1ee7   :  { %v5146_v40 = vpop.eup %5145 }
0x1ee8   :  { %v5148_v41 = vpop.eup %5147  ;;  %v3729_v43 = vmul.f32 %v5146_v40, %v5906_v62 }
0x1ee9   :  { %v3728_v44 = vmul.f32 %v5148_v41, %v5909_v11 }
0x1eea   :  { %v3737_v20 = vmul.f32 %v4219_v42, %v3729_v43 }
0x1eeb   :  { %v3736_v24 = vmul.f32 %v4219_v42, %v3728_v44 }
0x1eed   :  { %4787 = vmatprep.mubr.msk.f32.mxu0 %vm154_vm3, %v3736_v24  ;;  %4798 = vmatprep.mubr.msk.f32.mxu1 %vm154_vm3, %v3736_v24 }
0x1eee   :  { %4788 = vmatmul.mubr.msk.f32.vlgmr.msra.gmra.mrb[34].mxu0 %vm154_vm3, %v3737_v20  ;;  %4799 = vmatmul.mubr.msk.f32.vlgmr.msra.gmra.mrb[50].mxu1 %vm154_vm3, %v3737_v20 }
0x1eef   :  { %5010 = vmatpush3.bf16.msra.mxu0 %v5007_v51  ;;  %5042 = vmatpush3.bf16.msra.mxu1 %v5039_v10 }
0x1ef0   :  { %5012 = vmatprep.subr.bf16.mxu0 %v5011_v22  ;;  %5044 = vmatprep.subr.bf16.mxu1 %v5043_v52 }
0x1ef3   :  { %5014 = vmatpush3.bf16.msra.mxu0 %v5011_v22  ;;  %5046 = vmatpush3.bf16.msra.mxu1 %v5043_v52 }
0x1ef4   :  { %5016 = vmatprep.subr.bf16.mxu0 %v5015_v56 }
0x1ef7   :  { %5018 = vmatpush3.bf16.msra.mxu0 %v5015_v56 }
0x1ef8   :  { %5020 = vmatprep.subr.bf16.mxu0 %v5019_v1 }
0x1efb   :  { %5022 = vmatpush3.bf16.msra.mxu0 %v5019_v1 }
0x1efc   :  { %5024 = vmatprep.subr.bf16.mxu0 %v5023_v45 }
0x1eff   :  { %5026 = vmatpush3.bf16.msra.mxu0 %v5023_v45 }
0x1f00   :  { %5028 = vmatprep.subr.bf16.mxu0 %v5027_v25 }
0x1f03   :  { %5030 = vmatpush3.bf16.msra.mxu0 %v5027_v25 }
0x1f04   :  { %5032 = vmatprep.subr.bf16.mxu0 %v5031_v4 }
0x1f07   :  { %5034 = vmatpush3.bf16.msra.mxu0 %v5031_v4 }
0x1f08   :  { %5036 = vmatprep.subr.bf16.mxu0 %v5035_v7 }
0x1f0b   :  { %5038 = vmatpush3.bf16.msra.mxu0 %v5035_v7 }
0x1fc1   :  { %v4789_v12 = vpop.f32.mrb[34].mxu0  ;;  %v4800_v13 = vpop.f32.mrb[50].mxu1 }
0x1fc2   :  { %v4233_v14 = vmul.f32 -1.442695, %v4789_v12  ;;  %v3815_v57 = vpop.f32.mrb[35].mxu0  ;;  %v3895_v15 = vpop.f32.mrb[51].mxu1 }
0x1fc3   :  { %v4232_v16 = vmul.f32 -1.442695, %v3815_v57 }
0x1fc4   :  { %5149 = vpow2.f32 %v4233_v14 }
0x1fc5   :  { %5151 = vpow2.f32 %v4232_v16 }
0x1fce   :  { %v5150_v17 = vpop.eup %5149 }
0x1fcf   :  { %v5152_v18 = vpop.eup %5151  ;;  %v3911_v19 = vadd.f32 1.0, %v5150_v17 }
0x1fd0   :  { %v3910_v26 = vadd.f32 1.0, %v5152_v18 }
0x1fd1   :  { %5153 = vrcp.f32 %v3911_v19 }
0x1fd2   :  { %5155 = vrcp.f32 %v3910_v26 }
0x1fdb   :  { %v5154_v60 = vpop.eup %5153 }
0x1fdc   :  { %v5156_v63 = vpop.eup %5155  ;;  %v3917_v27 = vmul.f32 %v5154_v60, %v4789_v12 }
0x1fdd   :  { %v3916_v28 = vmul.f32 %v5156_v63, %v3815_v57 }
0x1fde   :  { %v3919_v29 = vmul.f32 %v4800_v13, %v3917_v27 }
0x1fdf   :  { %v3918_v48 = vmul.f32 %v3916_v28, %v3895_v15 }
0x1fe1   :  { %4833 = vmatprep.mubr.f32.mxu0 %v3918_v48 }
0x1fe2   :  { %4834 = vmatmul.mubr.f32.vlgmr.msra.gmra.mrb[36].mxu0 %v3919_v29 }
0x20b5   :  { %v4835_v31 = vpop.f32.mrb[36].mxu0 }
0x20b6   :  { %v4003_v33 = vpop.f32.mrb[37].mxu0  ;;  %v4013_v36 = vadd.f32 %v4835_v31, %v5906_v62 }
0x20b7   :  { %v4012_v35 = vadd.f32 %v4003_v33, %v5909_v11 }
0x20b9   :  { %4844 = vmatprep.mubr.msk.f32.mxu1 %vm154_vm3, %v4012_v35 }
0x20ba   :  { %4845 = vmatmul.mubr.msk.f32.vlgmr.msra.gmra.mrb[52].mxu1 %vm154_vm3, %v4013_v36 }
0x218d   :  { %v4846_v32 = vpop.f32.mrb[52].mxu1 }
0x218e   :  { %v4103_v34 = vadd.f32 %v4846_v32, %v4250_v37  ;;  %v4097_v38 = vpop.f32.mrb[53].mxu1 }
0x218f   :  { %v4098_v39 = vadd.f32 %v4250_v37, %v4097_v38 }
0x2190   :  { %4107 = vst.msk [vmem:[#allocation2 + $0x8] sm:$0xff] %vm66_vm0, %v4103_v34 }
0x2191   :  { %4106 = vst.msk [vmem:[#allocation2] sm:$0xff] %vm66_vm0, %v4098_v39 }
0x2192   :  { %5168 = shalt.err (!%p5165_p4)
}
0x2193   :  { %s5169_s27 = scalar_lea.hbm %s6043_s12, 256 }
0x2194   :  { %p5170_p5 = scmp.ne.s32.totalorder %s6043_s12, %s5169_s27  ;;  %p5173_p6 = scmp.lt.u32.totalorder %s5169_s27, %s6043_s12 }
0x2196   :  { %p5175_p7 = pnand %p5173_p6, %p5170_p5 }
0x2198   :  { %5178 = shalt.err (!%p5175_p7)
}
0x2199   :  { %s5192_s2 = smov 128   ;;  %s5193_s8 = smov 8  }
0x219a   :  { %4119 = dma.vmem_to_hbm [thread:$0]  %s4114_s25, 256, %s6043_s12, [#allocation3], %s5192_s2, %s5192_s2, %s5193_s8  }
0x219b   :  { %5179 = dma.done.wait [#allocation3], 256  }
0x219c   :  { %5180 = vsyncadd [#allocation3], 4294967040 }
0x219d   :  { %4123 = vsyncpa [#allocation3], 1 }

</bundles_post_ra>
